<compile_context>
chip_gen: v7x
topology: tpu7x:2x2x1
jax: 0.10.0
libtpu: 0.0.40
codegen_flags: <defaults>
</compile_context>

<pallas_src>
import jax
import jax.numpy as jnp
from jax.experimental import pallas as pl
from jax.experimental.pallas import tpu as pltpu

EPS = 1e-5
IN_FEATS = 1152   # = 128 * 3 * 3
MLFF_OUT = 512
FC2_OUT = 128
FC3_OUT = 2
LANE = 128        # fc3 path padded to full lane width
MAX_TILE_B = 512  # perf review: ~85% of HBM roofline; fits v7x 64 MiB VMEM


# ----------------------------------------------------------------------------
# Kernel
# ----------------------------------------------------------------------------
def predictor_kernel(
    # inputs
    x_ref,                        # (TILE_B, 1152) f32
    sc1_ref, sh1_ref,             # bn_fc  folded scale/shift   (1, 1152) f32
    w_mlff_ref, b_mlff_ref,       # MLFF linear                 (1152, 512) wdt, (1, 512) f32
    sc2_ref, sh2_ref,             # bn_fc2 folded scale/shift   (1, 512) f32
    w2_ref, b2_ref,               # fc2 linear (bn3 folded in)  (512, 128) wdt, (1, 128) f32
    w3_ref, b3_ref,               # fc3 linear (bn4 folded in, lane-padded) (128, 128) wdt, (1, 128) f32
    # outputs (side outputs absent in the sigmoid-only fast path)
    sig_ref,                      # (TILE_B, 128)  (only first 2 lanes are real)
    sbn1_ref=None,                # (TILE_B, 1152)
    mlffo_ref=None,               # (TILE_B, 512)
    sbn2_ref=None,                # (TILE_B, 512)
):
    x = x_ref[...].astype(jnp.float32)
    mxu_dtype = w_mlff_ref.dtype

    # s_bn1 = BatchNorm1d(1152)(x_flat) -- folded to scale/shift; side output
    # only (downstream path uses raw x / raw MLFF_out, as in the PyTorch source).
    if sbn1_ref is not None:
        sbn1_ref[...] = (x * sc1_ref[...] + sh1_ref[...]).astype(sbn1_ref.dtype)

    # MLFF layer (implemented as Linear 1152 -> 512); f32 accumulation.
    mlff = (
        jnp.dot(x.astype(mxu_dtype), w_mlff_ref[...],
                preferred_element_type=jnp.float32)
        + b_mlff_ref[...]
    )
    if mlffo_ref is not None:
        mlffo_ref[...] = mlff.astype(mlffo_ref.dtype)

    # s_bn2 = BatchNorm1d(512)(MLFF_out) -- folded to scale/shift; side output.
    if sbn2_ref is not None:
        sbn2_ref[...] = (mlff * sc2_ref[...] + sh2_ref[...]).astype(sbn2_ref.dtype)

    # relu -> fc2 (Dropout = identity in eval; Linear 512->128 with bn3 folded).
    h = jnp.maximum(mlff, 0.0)
    h = (
        jnp.dot(h.astype(mxu_dtype), w2_ref[...],
                preferred_element_type=jnp.float32)
        + b2_ref[...]
    )

    # relu -> fc3 (Linear 128->2 with bn4 folded, zero-padded to 128 lanes).
    h = jnp.maximum(h, 0.0)
    h = (
        jnp.dot(h.astype(mxu_dtype), w3_ref[...],
                preferred_element_type=jnp.float32)
        + b3_ref[...]
    )

    # sigmoid (padded lanes give sigmoid(0)=0.5; sliced off in the wrapper).
    sig_ref[...] = jax.nn.sigmoid(h).astype(sig_ref.dtype)


# ----------------------------------------------------------------------------
# Parameter construction / folding
# ----------------------------------------------------------------------------
def make_params(key):
    """Deterministic synthetic parameter set (no checkpoint loading)."""
    ks = jax.random.split(key, 32)
    k = iter(ks)

    def lin(kw, kb, fan_in, fan_out):
        # W stored as (in, out) so the kernel computes x @ W + b.
        w = jax.random.normal(kw, (fan_in, fan_out), jnp.float32) * (1.0 / jnp.sqrt(fan_in))
        b = jax.random.normal(kb, (1, fan_out), jnp.float32) * 0.01
        return w, b

    def bn(kg, kb, km, kv, n):
        g = 1.0 + 0.1 * jax.random.normal(kg, (1, n), jnp.float32)
        be = 0.1 * jax.random.normal(kb, (1, n), jnp.float32)
        m = 0.1 * jax.random.normal(km, (1, n), jnp.float32)
        v = 0.5 + jax.random.uniform(kv, (1, n), jnp.float32)   # strictly positive
        return g, be, m, v

    w_mlff, b_mlff = lin(next(k), next(k), IN_FEATS, MLFF_OUT)
    g1, be1, m1, v1 = bn(next(k), next(k), next(k), next(k), IN_FEATS)
    g2, be2, m2, v2 = bn(next(k), next(k), next(k), next(k), MLFF_OUT)
    w2, b2 = lin(next(k), next(k), MLFF_OUT, FC2_OUT)
    g3, be3, m3, v3 = bn(next(k), next(k), next(k), next(k), FC2_OUT)
    w3, b3 = lin(next(k), next(k), FC2_OUT, FC3_OUT)
    g4, be4, m4, v4 = bn(next(k), next(k), next(k), next(k), FC3_OUT)

    return dict(
        w_mlff=w_mlff, b_mlff=b_mlff,
        bn1=(g1, be1, m1, v1),
        bn2=(g2, be2, m2, v2),
        w2=w2, b2=b2, bn3=(g3, be3, m3, v3),
        w3=w3, b3=b3, bn4=(g4, be4, m4, v4),
    )


def _fold_bn(g, be, m, v):
    scale = g * jax.lax.rsqrt(v + EPS)
    shift = be - m * scale
    return scale, shift


def prepare_kernel_params(params, weight_dtype=jnp.bfloat16):
    """Fold BN into scale/shift (and into fc2/fc3 weights); cast weights.

    Only valid in inference mode (frozen running stats).  Use
    weight_dtype=jnp.float32 for parity testing against an f32 reference.
    """
    sc1, sh1 = _fold_bn(*params["bn1"])
    sc2, sh2 = _fold_bn(*params["bn2"])
    sc3, sh3 = _fold_bn(*params["bn3"])
    sc4, sh4 = _fold_bn(*params["bn4"])

    # fc2 + bn3:  bn3(h @ W2 + b2) == h @ (W2*sc3) + (b2*sc3 + sh3)
    w2_eff = (params["w2"] * sc3).astype(weight_dtype)          # (512, 128)
    b2_eff = params["b2"] * sc3 + sh3                           # (1, 128)

    # fc3 + bn4, zero-padded from 2 -> 128 output lanes
    w3_eff = params["w3"] * sc4                                 # (128, 2)
    b3_eff = params["b3"] * sc4 + sh4                           # (1, 2)
    w3_pad = jnp.zeros((FC2_OUT, LANE), jnp.float32)
    w3_pad = w3_pad.at[:, :FC3_OUT].set(w3_eff).astype(weight_dtype)
    b3_pad = jnp.zeros((1, LANE), jnp.float32).at[:, :FC3_OUT].set(b3_eff)

    return [
        sc1, sh1,
        params["w_mlff"].astype(weight_dtype), params["b_mlff"],
        sc2, sh2,
        w2_eff, b2_eff,
        w3_pad, b3_pad,
    ]


# ----------------------------------------------------------------------------
# Wrapper
# ----------------------------------------------------------------------------
def _round_up(n, m):
    return -(-n // m) * m


def predictor_forward(
    x_nchw,
    params,
    tile_b=None,
    return_side_outputs=True,
    side_output_dtype=jnp.float32,
    weight_dtype=jnp.bfloat16,
):
    B = x_nchw.shape[0]
    x_flat = x_nchw.reshape(B, -1).astype(jnp.float32)  # same order as torch .view
    assert x_flat.shape[1] == IN_FEATS

    if tile_b is None:
        if B >= 16:
            # >= 2 grid steps so the "parallel" axis shards across both v7x TCs;
            # capped at 512 (VMEM headroom on v7x, ~85% HBM roofline everywhere).
            tile_b = min(MAX_TILE_B, _round_up(-(-B // 2), 8))
        else:
            tile_b = _round_up(max(B, 1), 8)
    tile_b = max(8, (tile_b // 8) * 8)

    n_tiles = -(-B // tile_b)
    B_pad = n_tiles * tile_b
    if B_pad != B:
        x_flat = jnp.pad(x_flat, ((0, B_pad - B), (0, 0)))

    kparams = prepare_kernel_params(params, weight_dtype=weight_dtype)
    inputs = [x_flat] + kparams

    # Activations: blocked along batch, moving with the grid.
    x_spec = pl.BlockSpec((tile_b, IN_FEATS), lambda i: (i, 0))
    # Params: full-extent blocks with a constant index map -> fetched once and
    # VMEM-resident across grid steps (no per-step re-DMA).  Single-buffering
    # via pipeline_mode is intentionally not forced: the VMEM saving (<1.5 MiB)
    # is not worth the lowering risk at these sizes.
    param_specs = [pl.BlockSpec(a.shape, lambda i: (0, 0)) for a in kparams]
    in_specs = [x_spec] + param_specs

    out_shapes = [jax.ShapeDtypeStruct((B_pad, LANE), jnp.float32)]        # sigmoid (padded)
    if return_side_outputs:
        out_shapes += [
            jax.ShapeDtypeStruct((B_pad, IN_FEATS), side_output_dtype),    # s_bn1
            jax.ShapeDtypeStruct((B_pad, MLFF_OUT), side_output_dtype),    # MLFF_out
            jax.ShapeDtypeStruct((B_pad, MLFF_OUT), side_output_dtype),    # s_bn2
        ]
    out_shapes = tuple(out_shapes)
    out_specs = tuple(
        pl.BlockSpec((tile_b, s.shape[1]), lambda i: (i, 0)) for s in out_shapes
    )

    # Advisory cost estimate (kernel is HBM-bandwidth-bound on all generations).
    flops = 2 * B_pad * (IN_FEATS * MLFF_OUT + MLFF_OUT * FC2_OUT + FC2_OUT * LANE)
    w_itemsize = jnp.dtype(weight_dtype).itemsize
    weight_bytes = (IN_FEATS * MLFF_OUT + MLFF_OUT * FC2_OUT + FC2_OUT * LANE) * w_itemsize
    act_bytes = B_pad * (IN_FEATS + LANE) * 4
    if return_side_outputs:
        act_bytes += B_pad * (IN_FEATS + 2 * MLFF_OUT) * jnp.dtype(side_output_dtype).itemsize
    cost = pl.CostEstimate(
        flops=flops,
        transcendentals=B_pad * LANE,
        bytes_accessed=weight_bytes + act_bytes,
    )

    outs = pl.pallas_call(
        predictor_kernel,
        grid=(n_tiles,),
        in_specs=in_specs,
        out_specs=out_specs,
        out_shape=out_shapes,
        compiler_params=pltpu.CompilerParams(
            dimension_semantics=("parallel",),
            vmem_limit_bytes=40 * 1024 * 1024,
        ),
        cost_estimate=cost,
    )(*inputs)

    x_sig = outs[0][:B, :FC3_OUT]
    if not return_side_outputs:
        return x_sig

    sbn1 = outs[1][:B]
    mlff_out = outs[2][:B]
    sbn2 = outs[3][:B]

    # Return tuple matches PyTorch: (x_sig, s_bn1, MLFF_in, MLFF_out, s_bn2)
    return x_sig, sbn1, x_nchw, mlff_out, sbn2


if __name__ == "__main__":
    key = jax.random.PRNGKey(0)
    k_x, k_p = jax.random.split(key)

    # Small input consistent with the module: NCHW with C*H*W = 1152.
    B, C, H, W = 8, 128, 3, 3
    x = jax.random.normal(k_x, (B, C, H, W), jnp.float32)

    params = make_params(k_p)

    # Full forward (matches the PyTorch return tuple).
    outs = predictor_forward(x, params)
    outs = jax.block_until_ready(outs)

    x_sig, s_bn1, mlff_in, mlff_out, s_bn2 = outs
    assert x_sig.shape == (B, FC3_OUT)
    assert s_bn1.shape == (B, IN_FEATS)
    assert mlff_in.shape == (B, C, H, W)
    assert mlff_out.shape == (B, MLFF_OUT)
    assert s_bn2.shape == (B, MLFF_OUT)
    assert bool(jnp.all(jnp.isfinite(x_sig)))
    assert bool(jnp.all((x_sig > 0.0) & (x_sig < 1.0)))
    assert bool(jnp.all(jnp.isfinite(s_bn1)))
    assert bool(jnp.all(jnp.isfinite(mlff_out)))
    assert bool(jnp.all(jnp.isfinite(s_bn2)))

    # Inference-only fast path (sigmoid output only, ~2.5x less HBM traffic).
    x_sig_only = jax.block_until_ready(
        predictor_forward(x, params, return_side_outputs=False)
    )
    assert x_sig_only.shape == (B, FC3_OUT)
    assert bool(jnp.allclose(x_sig_only, x_sig, atol=1e-6, rtol=1e-6))

    print("KERNEL_OK")
</pallas_src>

<mosaic_0001>
module attributes {stable_mosaic.version = 11 : i64} {
  func.func @predictor_kernel(%arg0: i32, %arg1: memref<8x1152xf32, #tpu.memory_space<vmem>>, %arg2: memref<1x1152xf32, #tpu.memory_space<vmem>>, %arg3: memref<1x1152xf32, #tpu.memory_space<vmem>>, %arg4: memref<1152x512xbf16, #tpu.memory_space<vmem>>, %arg5: memref<1x512xf32, #tpu.memory_space<vmem>>, %arg6: memref<1x512xf32, #tpu.memory_space<vmem>>, %arg7: memref<1x512xf32, #tpu.memory_space<vmem>>, %arg8: memref<512x128xbf16, #tpu.memory_space<vmem>>, %arg9: memref<1x128xf32, #tpu.memory_space<vmem>>, %arg10: memref<128x128xbf16, #tpu.memory_space<vmem>>, %arg11: memref<1x128xf32, #tpu.memory_space<vmem>>, %arg12: memref<8x128xf32, #tpu.memory_space<vmem>>, %arg13: memref<8x1152xf32, #tpu.memory_space<vmem>>, %arg14: memref<8x512xf32, #tpu.memory_space<vmem>>, %arg15: memref<8x512xf32, #tpu.memory_space<vmem>>) attributes {dimension_semantics = [#tpu.dimension_semantics<parallel>], iteration_bounds = array<i64: 1>, scalar_prefetch = 0 : i64, scratch_operands = 0 : i64, tpu.core_type = #tpu.core_type<tc>, window_params = [{transform_indices = @transform_0, window_bounds = array<i64: 8, 1152>}, {pipeline_mode = #tpu.pipeline_mode<synchronous>, transform_indices = @transform_1, window_bounds = array<i64: 1, 1152>}, {pipeline_mode = #tpu.pipeline_mode<synchronous>, transform_indices = @transform_2, window_bounds = array<i64: 1, 1152>}, {pipeline_mode = #tpu.pipeline_mode<synchronous>, transform_indices = @transform_3, window_bounds = array<i64: 1152, 512>}, {pipeline_mode = #tpu.pipeline_mode<synchronous>, transform_indices = @transform_4, window_bounds = array<i64: 1, 512>}, {pipeline_mode = #tpu.pipeline_mode<synchronous>, transform_indices = @transform_5, window_bounds = array<i64: 1, 512>}, {pipeline_mode = #tpu.pipeline_mode<synchronous>, transform_indices = @transform_6, window_bounds = array<i64: 1, 512>}, {pipeline_mode = #tpu.pipeline_mode<synchronous>, transform_indices = @transform_7, window_bounds = array<i64: 512, 128>}, {pipeline_mode = #tpu.pipeline_mode<synchronous>, transform_indices = @transform_8, window_bounds = array<i64: 1, 128>}, {pipeline_mode = #tpu.pipeline_mode<synchronous>, transform_indices = @transform_9, window_bounds = array<i64: 128, 128>}, {pipeline_mode = #tpu.pipeline_mode<synchronous>, transform_indices = @transform_10, window_bounds = array<i64: 1, 128>}, {transform_indices = @transform_11, window_bounds = array<i64: 8, 128>}, {transform_indices = @transform_12, window_bounds = array<i64: 8, 1152>}, {transform_indices = @transform_13, window_bounds = array<i64: 8, 512>}, {transform_indices = @transform_14, window_bounds = array<i64: 8, 512>}]} {
    %c0 = arith.constant 0 : index
    %c0_0 = arith.constant 0 : index
    %0 = vector.load %arg1[%c0, %c0_0] : memref<8x1152xf32, #tpu.memory_space<vmem>>, vector<8x1152xf32>
    %c0_1 = arith.constant 0 : index
    %c0_2 = arith.constant 0 : index
    %1 = vector.load %arg2[%c0_1, %c0_2] : memref<1x1152xf32, #tpu.memory_space<vmem>>, vector<1x1152xf32>
    %2 = vector.broadcast %1 : vector<1x1152xf32> to vector<8x1152xf32>
    %3 = arith.mulf %0, %2 : vector<8x1152xf32>
    %c0_3 = arith.constant 0 : index
    %c0_4 = arith.constant 0 : index
    %4 = vector.load %arg3[%c0_3, %c0_4] : memref<1x1152xf32, #tpu.memory_space<vmem>>, vector<1x1152xf32>
    %5 = vector.broadcast %4 : vector<1x1152xf32> to vector<8x1152xf32>
    %6 = arith.addf %3, %5 : vector<8x1152xf32>
    %c0_5 = arith.constant 0 : index
    %c0_6 = arith.constant 0 : index
    %7 = vector.load %arg13[%c0_5, %c0_6] : memref<8x1152xf32, #tpu.memory_space<vmem>>, vector<8x1152xf32>
    tpu.vector_store %arg13[%c0_5, %c0_6], %6 {strides = array<i32>} : memref<8x1152xf32, #tpu.memory_space<vmem>>, vector<8x1152xf32>,
    %8 = arith.truncf %0 : vector<8x1152xf32> to vector<8x1152xbf16>
    %c0_7 = arith.constant 0 : index
    %c0_8 = arith.constant 0 : index
    %9 = vector.load %arg4[%c0_7, %c0_8] : memref<1152x512xbf16, #tpu.memory_space<vmem>>, vector<1152x512xbf16>
    %cst = arith.constant dense<0.000000e+00> : vector<8x512xf32>
    %10 = tpu.matmul %8, %9, %cst {dimension_numbers = #tpu.dot_dimension_numbers<[1], [0], [0], [1], [0, 0, 1, 1], [], []>} : vector<8x1152xbf16>, vector<1152x512xbf16>, vector<8x512xf32> -> vector<8x512xf32>
    %c0_9 = arith.constant 0 : index
    %c0_10 = arith.constant 0 : index
    %11 = vector.load %arg5[%c0_9, %c0_10] : memref<1x512xf32, #tpu.memory_space<vmem>>, vector<1x512xf32>
    %12 = vector.broadcast %11 : vector<1x512xf32> to vector<8x512xf32>
    %13 = arith.addf %10, %12 : vector<8x512xf32>
    %c0_11 = arith.constant 0 : index
    %c0_12 = arith.constant 0 : index
    %14 = vector.load %arg14[%c0_11, %c0_12] : memref<8x512xf32, #tpu.memory_space<vmem>>, vector<8x512xf32>
    tpu.vector_store %arg14[%c0_11, %c0_12], %13 {strides = array<i32>} : memref<8x512xf32, #tpu.memory_space<vmem>>, vector<8x512xf32>,
    %c0_13 = arith.constant 0 : index
    %c0_14 = arith.constant 0 : index
    %15 = vector.load %arg6[%c0_13, %c0_14] : memref<1x512xf32, #tpu.memory_space<vmem>>, vector<1x512xf32>
    %16 = vector.broadcast %15 : vector<1x512xf32> to vector<8x512xf32>
    %17 = arith.mulf %13, %16 : vector<8x512xf32>
    %c0_15 = arith.constant 0 : index
    %c0_16 = arith.constant 0 : index
    %18 = vector.load %arg7[%c0_15, %c0_16] : memref<1x512xf32, #tpu.memory_space<vmem>>, vector<1x512xf32>
    %19 = vector.broadcast %18 : vector<1x512xf32> to vector<8x512xf32>
    %20 = arith.addf %17, %19 : vector<8x512xf32>
    %c0_17 = arith.constant 0 : index
    %c0_18 = arith.constant 0 : index
    %21 = vector.load %arg15[%c0_17, %c0_18] : memref<8x512xf32, #tpu.memory_space<vmem>>, vector<8x512xf32>
    tpu.vector_store %arg15[%c0_17, %c0_18], %20 {strides = array<i32>} : memref<8x512xf32, #tpu.memory_space<vmem>>, vector<8x512xf32>,
    %cst_19 = arith.constant 0.000000e+00 : f32
    %22 = vector.broadcast %cst_19 : f32 to vector<8x512xf32>
    %23 = arith.maximumf %13, %22 : vector<8x512xf32>
    %24 = arith.truncf %23 : vector<8x512xf32> to vector<8x512xbf16>
    %c0_20 = arith.constant 0 : index
    %c0_21 = arith.constant 0 : index
    %25 = vector.load %arg8[%c0_20, %c0_21] : memref<512x128xbf16, #tpu.memory_space<vmem>>, vector<512x128xbf16>
    %cst_22 = arith.constant dense<0.000000e+00> : vector<8x128xf32>
    %26 = tpu.matmul %24, %25, %cst_22 {dimension_numbers = #tpu.dot_dimension_numbers<[1], [0], [0], [1], [0, 0, 1, 1], [], []>} : vector<8x512xbf16>, vector<512x128xbf16>, vector<8x128xf32> -> vector<8x128xf32>
    %c0_23 = arith.constant 0 : index
    %c0_24 = arith.constant 0 : index
    %27 = vector.load %arg9[%c0_23, %c0_24] : memref<1x128xf32, #tpu.memory_space<vmem>>, vector<1x128xf32>
    %28 = vector.broadcast %27 : vector<1x128xf32> to vector<8x128xf32>
    %29 = arith.addf %26, %28 : vector<8x128xf32>
    %cst_25 = arith.constant 0.000000e+00 : f32
    %30 = vector.broadcast %cst_25 : f32 to vector<8x128xf32>
    %31 = arith.maximumf %29, %30 : vector<8x128xf32>
    %32 = arith.truncf %31 : vector<8x128xf32> to vector<8x128xbf16>
    %c0_26 = arith.constant 0 : index
    %c0_27 = arith.constant 0 : index
    %33 = vector.load %arg10[%c0_26, %c0_27] : memref<128x128xbf16, #tpu.memory_space<vmem>>, vector<128x128xbf16>
    %cst_28 = arith.constant dense<0.000000e+00> : vector<8x128xf32>
    %34 = tpu.matmul %32, %33, %cst_28 {dimension_numbers = #tpu.dot_dimension_numbers<[1], [0], [0], [1], [0, 0, 1, 1], [], []>} : vector<8x128xbf16>, vector<128x128xbf16>, vector<8x128xf32> -> vector<8x128xf32>
    %c0_29 = arith.constant 0 : index
    %c0_30 = arith.constant 0 : index
    %35 = vector.load %arg11[%c0_29, %c0_30] : memref<1x128xf32, #tpu.memory_space<vmem>>, vector<1x128xf32>
    %36 = vector.broadcast %35 : vector<1x128xf32> to vector<8x128xf32>
    %37 = arith.addf %34, %36 : vector<8x128xf32>
    %38 = arith.negf %37 : vector<8x128xf32>
    %39 = math.exp %38 : vector<8x128xf32>
    %cst_31 = arith.constant 1.000000e+00 : f32
    %40 = vector.broadcast %cst_31 : f32 to vector<8x128xf32>
    %41 = arith.addf %40, %39 : vector<8x128xf32>
    %42 = arith.divf %40, %41 : vector<8x128xf32>
    %c0_32 = arith.constant 0 : index
    %c0_33 = arith.constant 0 : index
    %43 = vector.load %arg12[%c0_32, %c0_33] : memref<8x128xf32, #tpu.memory_space<vmem>>, vector<8x128xf32>
    tpu.vector_store %arg12[%c0_32, %c0_33], %42 {strides = array<i32>} : memref<8x128xf32, #tpu.memory_space<vmem>>, vector<8x128xf32>,
    return
  }
  func.func @transform_0(%arg0: i32) -> (i32, i32) {
    %c0_i32 = arith.constant 0 : i32
    %c0_i32_0 = arith.constant 0 : i32
    return %arg0, %c0_i32 : i32, i32
  }
  func.func @transform_1(%arg0: i32) -> (i32, i32) {
    %c0_i32 = arith.constant 0 : i32
    %c0_i32_0 = arith.constant 0 : i32
    %c0_i32_1 = arith.constant 0 : i32
    return %c0_i32, %c0_i32_0 : i32, i32
  }
  func.func @transform_2(%arg0: i32) -> (i32, i32) {
    %c0_i32 = arith.constant 0 : i32
    %c0_i32_0 = arith.constant 0 : i32
    %c0_i32_1 = arith.constant 0 : i32
    return %c0_i32, %c0_i32_0 : i32, i32
  }
  func.func @transform_3(%arg0: i32) -> (i32, i32) {
    %c0_i32 = arith.constant 0 : i32
    %c0_i32_0 = arith.constant 0 : i32
    %c0_i32_1 = arith.constant 0 : i32
    return %c0_i32, %c0_i32_0 : i32, i32
  }
  func.func @transform_4(%arg0: i32) -> (i32, i32) {
    %c0_i32 = arith.constant 0 : i32
    %c0_i32_0 = arith.constant 0 : i32
    %c0_i32_1 = arith.constant 0 : i32
    return %c0_i32, %c0_i32_0 : i32, i32
  }
  func.func @transform_5(%arg0: i32) -> (i32, i32) {
    %c0_i32 = arith.constant 0 : i32
    %c0_i32_0 = arith.constant 0 : i32
    %c0_i32_1 = arith.constant 0 : i32
    return %c0_i32, %c0_i32_0 : i32, i32
  }
  func.func @transform_6(%arg0: i32) -> (i32, i32) {
    %c0_i32 = arith.constant 0 : i32
    %c0_i32_0 = arith.constant 0 : i32
    %c0_i32_1 = arith.constant 0 : i32
    return %c0_i32, %c0_i32_0 : i32, i32
  }
  func.func @transform_7(%arg0: i32) -> (i32, i32) {
    %c0_i32 = arith.constant 0 : i32
    %c0_i32_0 = arith.constant 0 : i32
    %c0_i32_1 = arith.constant 0 : i32
    return %c0_i32, %c0_i32_0 : i32, i32
  }
  func.func @transform_8(%arg0: i32) -> (i32, i32) {
    %c0_i32 = arith.constant 0 : i32
    %c0_i32_0 = arith.constant 0 : i32
    %c0_i32_1 = arith.constant 0 : i32
    return %c0_i32, %c0_i32_0 : i32, i32
  }
  func.func @transform_9(%arg0: i32) -> (i32, i32) {
    %c0_i32 = arith.constant 0 : i32
    %c0_i32_0 = arith.constant 0 : i32
    %c0_i32_1 = arith.constant 0 : i32
    return %c0_i32, %c0_i32_0 : i32, i32
  }
  func.func @transform_10(%arg0: i32) -> (i32, i32) {
    %c0_i32 = arith.constant 0 : i32
    %c0_i32_0 = arith.constant 0 : i32
    %c0_i32_1 = arith.constant 0 : i32
    return %c0_i32, %c0_i32_0 : i32, i32
  }
  func.func @transform_11(%arg0: i32) -> (i32, i32) {
    %c0_i32 = arith.constant 0 : i32
    %c0_i32_0 = arith.constant 0 : i32
    return %arg0, %c0_i32 : i32, i32
  }
  func.func @transform_12(%arg0: i32) -> (i32, i32) {
    %c0_i32 = arith.constant 0 : i32
    %c0_i32_0 = arith.constant 0 : i32
    return %arg0, %c0_i32 : i32, i32
  }
  func.func @transform_13(%arg0: i32) -> (i32, i32) {
    %c0_i32 = arith.constant 0 : i32
    %c0_i32_0 = arith.constant 0 : i32
    return %arg0, %c0_i32 : i32, i32
  }
  func.func @transform_14(%arg0: i32) -> (i32, i32) {
    %c0_i32 = arith.constant 0 : i32
    %c0_i32_0 = arith.constant 0 : i32
    return %arg0, %c0_i32 : i32, i32
  }
}

</mosaic_0001>

<bundles_post_ra>
// kernel: tpu_custom_call.1
= control target key start
LH: loop header
LB: loop body
LE: loop exit
PB: predicated region body
PF: predicated region fallthrough
CT: control target
= control target key end

     0   :  { %20 = vsyncpa [#allocation3], 0  ;;  %s4740_s0 = inlined_call_operand.hbm [shape: f32[8,1152], index: 0, kind: input, shape index: {}]   ;;  %s4741_s1 = inlined_call_operand.hbm [shape: f32[1,1152], index: 1, kind: input, shape index: {}]   ;;  %s4742_s2 = inlined_call_operand.hbm [shape: f32[1,1152], index: 2, kind: input, shape index: {}]   ;;  %s4743_s3 = inlined_call_operand.hbm [shape: bf16[1152,512], index: 3, kind: input, shape index: {}]   ;;  %s4744_s4 = inlined_call_operand.hbm [shape: f32[1,512], index: 4, kind: input, shape index: {}]   ;;  %s4745_s5 = inlined_call_operand.hbm [shape: f32[1,512], index: 5, kind: input, shape index: {}]   ;;  %s4746_s6 = inlined_call_operand.hbm [shape: f32[1,512], index: 6, kind: input, shape index: {}]   ;;  %s4747_s7 = inlined_call_operand.hbm [shape: bf16[512,128], index: 7, kind: input, shape index: {}]   ;;  %s4748_s8 = inlined_call_operand.hbm [shape: f32[1,128], index: 8, kind: input, shape index: {}]   ;;  %s4749_s9 = inlined_call_operand.hbm [shape: bf16[128,128], index: 9, kind: input, shape index: {}]   ;;  %s4750_s10 = inlined_call_operand.hbm [shape: f32[1,128], index: 10, kind: input, shape index: {}]   ;;  %s4751_s11 = inlined_call_operand.hbm [shape: f32[8,128], index: 11, kind: output, shape index: {0}]   ;;  %s4752_s12 = inlined_call_operand.hbm [shape: f32[8,1152], index: 12, kind: output, shape index: {1}]   ;;  %s4753_s13 = inlined_call_operand.hbm [shape: f32[8,512], index: 13, kind: output, shape index: {2}]   ;;  %s4754_s14 = inlined_call_operand.hbm [shape: f32[8,512], index: 14, kind: output, shape index: {3}]  }
   0x1   :  { %21 = vsyncpa [#allocation6], 0 }
   0x2   :  { %22 = vsyncpa [#allocation9], 0 }
   0x3   :  { %23 = vsyncpa [#allocation12], 0 }
   0x4   :  { %24 = vsyncpa [#allocation15], 0 }
   0x5   :  { %25 = vsyncpa [#allocation18], 0 }
   0x6   :  { %26 = vsyncpa [#allocation4], 0 }
   0x7   :  { %27 = vsyncpa [#allocation22], 0 }
   0x8   :  { %28 = vsyncpa [#allocation25], 0  ;;  %s4364_s29 = smov [#allocation5]   ;;  %s4365_s15 = smov [#allocation8]  }
   0x9   :  { %s45_s30 = sshll.u32 %s4364_s29, 4  ;;  %s64_s16 = sshll.u32 %s4365_s15, 4  ;;  %s46_s30 = int_to_ptr.vmem [resolvable:$true] %s45_s30  ;;  %s4461_s16 = int_to_ptr.vmem [resolvable:$true] %s64_s16 }
   0xa   :  { %s4016_s19 = scalar_lea.hbm %s4741_s1, 144 }
   0xb   :  { %p4017_p0 = scmp.ne.s32.totalorder %s4741_s1, %s4016_s19  ;;  %p4020_p1 = scmp.lt.u32.totalorder %s4016_s19, %s4741_s1 }
   0xd   :  { %p4022_p2 = pnand %p4020_p1, %p4017_p0 }
   0xf   :  { %4025 = shalt.err (!%p4022_p2)
}
  0x10   :  { %s4026_s24 = scalar_lea.vmem %s46_s30, 144  ;;  %s4030_s25 = scalar_lea.vmem %s46_s30, 160 }
  0x11   :  { %p4027_p3 = scmp.ne.s32.totalorder %s46_s30, %s4026_s24  ;;  %p4031_p4 = scmp.lt.s32.totalorder %s46_s30, %s46_s30 }
  0x12   :  { %p4032_p5 = scmp.lt.s32.totalorder %s4030_s25, %s4026_s24 }
  0x14   :  { %p4033_p6 = por %p4032_p5, %p4031_p4 }
  0x16   :  { %p4034_p7 = pnand %p4033_p6, %p4027_p3 }
  0x18   :  { %4037 = shalt.err (!%p4034_p7)
}
  0x19   :  { %48 = dma.hbm_to_vmem [thread:$0]  %s4741_s1, 144, %s46_s30, [#allocation6]  }
  0x1a   :  { %s4038_s15 = scalar_lea.hbm %s4743_s3, 36864 }
  0x1b   :  { %p4039_p8 = scmp.ne.s32.totalorder %s4743_s3, %s4038_s15  ;;  %p4042_p9 = scmp.lt.u32.totalorder %s4038_s15, %s4743_s3 }
  0x1d   :  { %p4044_p10 = pnand %p4042_p9, %p4039_p8 }
  0x1f   :  { %4047 = shalt.err (!%p4044_p10)
}
  0x20   :  { %s4048_s21 = scalar_lea.vmem %s4461_s16, 36864  ;;  %p4053_p12 = scmp.lt.s32.totalorder %s4461_s16, %s4461_s16 }
  0x21   :  { %p4049_p11 = scmp.ne.s32.totalorder %s4461_s16, %s4048_s21  ;;  %p4054_p13 = scmp.lt.s32.totalorder %s4048_s21, %s4048_s21 }
  0x23   :  { %p4055_p0 = por %p4054_p13, %p4053_p12 }
  0x25   :  { %p4056_p1 = pnand %p4055_p0, %p4049_p11 }
  0x27   :  { %4059 = shalt.err (!%p4056_p1)
}
  0x28   :  { %s4366_s1 = smov 256   ;;  %s4367_s30 = smov 16  }
  0x29   :  { %70 = dma.hbm_to_vmem [thread:$0]  %s4743_s3, 36864, %s4461_s16, [#allocation9], %s4366_s1, %s4366_s1, %s4367_s30  }
  0x2a   :  { %s4368_s24 = smov [#allocation11]   ;;  %s4369_s26 = smov [#allocation14]  }
  0x2b   :  { %s87_s25 = sshll.u32 %s4368_s24, 4  ;;  %s106_s27 = sshll.u32 %s4369_s26, 4  ;;  %s88_s25 = int_to_ptr.vmem [resolvable:$true] %s87_s25  ;;  %s4492_s27 = int_to_ptr.vmem [resolvable:$true] %s106_s27 }
  0x2c   :  { %s4060_s15 = scalar_lea.hbm %s4745_s5, 64 }
  0x2d   :  { %p4061_p2 = scmp.ne.s32.totalorder %s4745_s5, %s4060_s15  ;;  %p4064_p3 = scmp.lt.u32.totalorder %s4060_s15, %s4745_s5 }
  0x2f   :  { %p4066_p4 = pnand %p4064_p3, %p4061_p2 }
  0x31   :  { %4069 = shalt.err (!%p4066_p4)
}
  0x32   :  { %s4070_s3 = scalar_lea.vmem %s88_s25, 64  ;;  %p4075_p6 = scmp.lt.s32.totalorder %s88_s25, %s88_s25 }
  0x33   :  { %p4071_p5 = scmp.ne.s32.totalorder %s88_s25, %s4070_s3  ;;  %p4076_p7 = scmp.lt.s32.totalorder %s4070_s3, %s4070_s3 }
  0x35   :  { %p4077_p8 = por %p4076_p7, %p4075_p6 }
  0x37   :  { %p4078_p9 = pnand %p4077_p8, %p4071_p5 }
  0x39   :  { %4081 = shalt.err (!%p4078_p9)
}
  0x3a   :  { %90 = dma.hbm_to_vmem [thread:$0]  %s4745_s5, 64, %s88_s25, [#allocation12]  }
  0x3b   :  { %s4082_s22 = scalar_lea.hbm %s4747_s7, 4096 }
  0x3c   :  { %p4083_p10 = scmp.ne.s32.totalorder %s4747_s7, %s4082_s22  ;;  %p4086_p11 = scmp.lt.u32.totalorder %s4082_s22, %s4747_s7 }
  0x3e   :  { %p4088_p12 = pnand %p4086_p11, %p4083_p10 }
  0x40   :  { %4091 = shalt.err (!%p4088_p12)
}
  0x41   :  { %s4092_s29 = scalar_lea.vmem %s4492_s27, 4096  ;;  %p4097_p0 = scmp.lt.s32.totalorder %s4492_s27, %s4492_s27 }
  0x42   :  { %p4093_p13 = scmp.ne.s32.totalorder %s4492_s27, %s4092_s29  ;;  %p4098_p1 = scmp.lt.s32.totalorder %s4092_s29, %s4092_s29 }
  0x44   :  { %p4099_p2 = por %p4098_p1, %p4097_p0 }
  0x46   :  { %p4100_p3 = pnand %p4099_p2, %p4093_p13 }
  0x48   :  { %4103 = shalt.err (!%p4100_p3)
}
  0x49   :  { %s4370_s5 = smov 64   ;;  %s4371_s25 = smov 4  }
  0x4a   :  { %112 = dma.hbm_to_vmem [thread:$0]  %s4747_s7, 4096, %s4492_s27, [#allocation15], %s4370_s5, %s4370_s5, %s4371_s25  }
  0x4b   :  { %s4372_s18 = smov [#allocation17]   ;;  %s4373_s20 = smov [#allocation2]  }
  0x4c   :  { %s128_s19 = sshll.u32 %s4372_s18, 4  ;;  %s35_s3 = sshll.u32 %s4373_s20, 4  ;;  %s129_s19 = int_to_ptr.vmem [resolvable:$true] %s128_s19  ;;  %s36_s3 = int_to_ptr.vmem [resolvable:$true] %s35_s3 }
  0x4d   :  { %s4104_s1 = scalar_lea.hbm %s4749_s9, 1024 }
  0x4e   :  { %p4105_p4 = scmp.ne.s32.totalorder %s4749_s9, %s4104_s1  ;;  %p4108_p5 = scmp.lt.u32.totalorder %s4104_s1, %s4749_s9 }
  0x50   :  { %p4110_p6 = pnand %p4108_p5, %p4105_p4 }
  0x52   :  { %4113 = shalt.err (!%p4110_p6)
}
  0x53   :  { %s4114_s7 = scalar_lea.vmem %s129_s19, 1024  ;;  %p4119_p8 = scmp.lt.s32.totalorder %s129_s19, %s129_s19 }
  0x54   :  { %p4115_p7 = scmp.ne.s32.totalorder %s129_s19, %s4114_s7  ;;  %p4120_p9 = scmp.lt.s32.totalorder %s4114_s7, %s4114_s7 }
  0x56   :  { %p4121_p10 = por %p4120_p9, %p4119_p8 }
  0x58   :  { %p4122_p11 = pnand %p4121_p10, %p4115_p7 }
  0x5a   :  { %4125 = shalt.err (!%p4122_p11)
}
  0x5b   :  { %134 = dma.hbm_to_vmem [thread:$0]  %s4749_s9, 1024, %s129_s19, [#allocation18], %s4370_s5, %s4370_s5, %s4371_s25  }
  0x5c   :  { %s4126_s15 = scalar_lea.hbm %s4740_s0, 1152 }
  0x5d   :  { %p4127_p12 = scmp.ne.s32.totalorder %s4740_s0, %s4126_s15  ;;  %p4130_p13 = scmp.lt.u32.totalorder %s4126_s15, %s4740_s0 }
  0x5f   :  { %p4132_p0 = pnand %p4130_p13, %p4127_p12 }
  0x61   :  { %4135 = shalt.err (!%p4132_p0)
}
  0x62   :  { %s4136_s21 = scalar_lea.vmem %s36_s3, 1152  ;;  %p4141_p2 = scmp.lt.s32.totalorder %s36_s3, %s36_s3 }
  0x63   :  { %p4137_p1 = scmp.ne.s32.totalorder %s36_s3, %s4136_s21  ;;  %p4142_p3 = scmp.lt.s32.totalorder %s4136_s21, %s4136_s21 }
  0x65   :  { %p4143_p4 = por %p4142_p3, %p4141_p2 }
  0x67   :  { %p4144_p5 = pnand %p4143_p4, %p4137_p1 }
  0x69   :  { %4147 = shalt.err (!%p4144_p5)
}
  0x6a   :  { %38 = dma.hbm_to_vmem [thread:$0]  %s4740_s0, 1152, %s36_s3, [#allocation3]  }
  0x6b   :  { %s4374_s25 = smov [#allocation7]   ;;  %s4375_s1 = smov [#allocation10]  }
  0x6c   :  { %s55_s19 = sshll.u32 %s4374_s25, 4  ;;  %s77_s30 = sshll.u32 %s4375_s1, 4  ;;  %s56_s19 = int_to_ptr.vmem [resolvable:$true] %s55_s19  ;;  %s78_s30 = int_to_ptr.vmem [resolvable:$true] %s77_s30 }
  0x6d   :  { %s4148_s24 = scalar_lea.hbm %s4742_s2, 144 }
  0x6e   :  { %p4149_p6 = scmp.ne.s32.totalorder %s4742_s2, %s4148_s24  ;;  %p4152_p7 = scmp.lt.u32.totalorder %s4148_s24, %s4742_s2 }
  0x70   :  { %p4154_p8 = pnand %p4152_p7, %p4149_p6 }
  0x72   :  { %4157 = shalt.err (!%p4154_p8)
}
  0x73   :  { %s4158_s0 = scalar_lea.vmem %s56_s19, 144  ;;  %s4162_s3 = scalar_lea.vmem %s56_s19, 160 }
  0x74   :  { %p4159_p9 = scmp.ne.s32.totalorder %s56_s19, %s4158_s0  ;;  %p4163_p10 = scmp.lt.s32.totalorder %s56_s19, %s56_s19 }
  0x75   :  { %p4164_p11 = scmp.lt.s32.totalorder %s4162_s3, %s4158_s0 }
  0x77   :  { %p4165_p12 = por %p4164_p11, %p4163_p10 }
  0x79   :  { %p4166_p13 = pnand %p4165_p12, %p4159_p9 }
  0x7b   :  { %4169 = shalt.err (!%p4166_p13)
}
  0x7c   :  { %58 = dma.hbm_to_vmem [thread:$0]  %s4742_s2, 144, %s56_s19, [#allocation6]  }
  0x7d   :  { %s4170_s20 = scalar_lea.hbm %s4744_s4, 64 }
  0x7e   :  { %p4171_p0 = scmp.ne.s32.totalorder %s4744_s4, %s4170_s20  ;;  %p4174_p1 = scmp.lt.u32.totalorder %s4170_s20, %s4744_s4 }
  0x80   :  { %p4176_p2 = pnand %p4174_p1, %p4171_p0 }
  0x82   :  { %4179 = shalt.err (!%p4176_p2)
}
  0x83   :  { %s4180_s25 = scalar_lea.vmem %s78_s30, 64  ;;  %p4185_p4 = scmp.lt.s32.totalorder %s78_s30, %s78_s30 }
  0x84   :  { %p4181_p3 = scmp.ne.s32.totalorder %s78_s30, %s4180_s25  ;;  %p4186_p5 = scmp.lt.s32.totalorder %s4180_s25, %s4180_s25 }
  0x86   :  { %p4187_p6 = por %p4186_p5, %p4185_p4 }
  0x88   :  { %p4188_p7 = pnand %p4187_p6, %p4181_p3 }
  0x8a   :  { %4191 = shalt.err (!%p4188_p7)
}
  0x8b   :  { %80 = dma.hbm_to_vmem [thread:$0]  %s4744_s4, 64, %s78_s30, [#allocation9]  }
  0x8c   :  { %s4376_s1 = smov [#allocation13]   ;;  %s4377_s23 = smov [#allocation16]  }
  0x8d   :  { %s97_s22 = sshll.u32 %s4376_s1, 4  ;;  %s119_s24 = sshll.u32 %s4377_s23, 4  ;;  %s98_s22 = int_to_ptr.vmem [resolvable:$true] %s97_s22  ;;  %s120_s24 = int_to_ptr.vmem [resolvable:$true] %s119_s24 }
  0x8e   :  { %s4192_s26 = scalar_lea.hbm %s4746_s6, 64 }
  0x8f   :  { %p4193_p8 = scmp.ne.s32.totalorder %s4746_s6, %s4192_s26  ;;  %p4196_p9 = scmp.lt.u32.totalorder %s4192_s26, %s4746_s6 }
  0x91   :  { %p4198_p10 = pnand %p4196_p9, %p4193_p8 }
  0x93   :  { %4201 = shalt.err (!%p4198_p10)
}
  0x94   :  { %s4202_s4 = scalar_lea.vmem %s98_s22, 64  ;;  %p4207_p12 = scmp.lt.s32.totalorder %s98_s22, %s98_s22 }
  0x95   :  { %p4203_p11 = scmp.ne.s32.totalorder %s98_s22, %s4202_s4  ;;  %p4208_p13 = scmp.lt.s32.totalorder %s4202_s4, %s4202_s4 }
  0x97   :  { %p4209_p0 = por %p4208_p13, %p4207_p12 }
  0x99   :  { %p4210_p1 = pnand %p4209_p0, %p4203_p11 }
  0x9b   :  { %4213 = shalt.err (!%p4210_p1)
}
  0x9c   :  { %100 = dma.hbm_to_vmem [thread:$0]  %s4746_s6, 64, %s98_s22, [#allocation12]  }
  0x9d   :  { %s4214_s20 = scalar_lea.hbm %s4748_s8, 16 }
  0x9e   :  { %p4215_p2 = scmp.ne.s32.totalorder %s4748_s8, %s4214_s20  ;;  %p4218_p3 = scmp.lt.u32.totalorder %s4214_s20, %s4748_s8 }
  0xa0   :  { %p4220_p4 = pnand %p4218_p3, %p4215_p2 }
  0xa2   :  { %4223 = shalt.err (!%p4220_p4)
}
  0xa3   :  { %s4224_s25 = scalar_lea.vmem %s120_s24, 16  ;;  %s4228_s2 = scalar_lea.vmem %s120_s24, 32 }
  0xa4   :  { %p4225_p5 = scmp.ne.s32.totalorder %s120_s24, %s4224_s25  ;;  %p4229_p6 = scmp.lt.s32.totalorder %s120_s24, %s120_s24 }
  0xa5   :  { %p4230_p7 = scmp.lt.s32.totalorder %s4228_s2, %s4224_s25 }
  0xa7   :  { %p4231_p8 = por %p4230_p7, %p4229_p6 }
  0xa9   :  { %p4232_p9 = pnand %p4231_p8, %p4225_p5 }
  0xab   :  { %4235 = shalt.err (!%p4232_p9)
}
  0xac   :  { %122 = dma.hbm_to_vmem [thread:$0]  %s4748_s8, 16, %s120_s24, [#allocation15]  }
  0xad   :  { %s4378_s1 = smov [#allocation19]   ;;  %s4236_s27 = scalar_lea.hbm %s4750_s10, 16 }
  0xae   :  { %s141_s22 = sshll.u32 %s4378_s1, 4  ;;  %p4237_p10 = scmp.ne.s32.totalorder %s4750_s10, %s4236_s27  ;;  %s142_s22 = int_to_ptr.vmem [resolvable:$true] %s141_s22 }
  0xaf   :  { %p4240_p11 = scmp.lt.u32.totalorder %s4236_s27, %s4750_s10 }
  0xb1   :  { %p4242_p12 = pnand %p4240_p11, %p4237_p10 }
  0xb3   :  { %4245 = shalt.err (!%p4242_p12)
}
  0xb4   :  { %s4246_s29 = scalar_lea.vmem %s142_s22, 16  ;;  %s4250_s8 = scalar_lea.vmem %s142_s22, 32 }
  0xb5   :  { %p4247_p13 = scmp.ne.s32.totalorder %s142_s22, %s4246_s29  ;;  %p4251_p0 = scmp.lt.s32.totalorder %s142_s22, %s142_s22 }
  0xb6   :  { %p4252_p1 = scmp.lt.s32.totalorder %s4250_s8, %s4246_s29 }
  0xb8   :  { %p4253_p2 = por %p4252_p1, %p4251_p0 }
  0xba   :  { %p4254_p3 = pnand %p4253_p2, %p4247_p13 }
  0xbc   :  { %4257 = shalt.err (!%p4254_p3)
}
  0xbd   :  { %144 = dma.hbm_to_vmem [thread:$0]  %s4750_s10, 16, %s142_s22, [#allocation18]  }
  0xbe   :  { %4346 = dma.done.wait [#allocation3], 1152  }
  0xbf   :  { %4347 = vsyncadd [#allocation3], 4294966144 }
  0xc0   :  { %4348 = dma.done.wait [#allocation6], 288  }
  0xc1   :  { %4349 = vsyncadd [#allocation6], 4294967008 }
  0xc2   :  { %4350 = dma.done.wait [#allocation9], 36928  }
  0xc3   :  { %4351 = vsyncadd [#allocation9], 4294930368 }
  0xc4   :  { %4352 = dma.done.wait [#allocation12], 128  }
  0xc5   :  { %4353 = vsyncadd [#allocation12], 4294967168 }
  0xc6   :  { %4354 = dma.done.wait [#allocation15], 4112  }
  0xc7   :  { %4355 = vsyncadd [#allocation15], 4294963184 }
  0xc8   :  { %4356 = dma.done.wait [#allocation18], 1040  }
  0xc9   :  { %4357 = vsyncadd [#allocation18], 4294966256  ;;  %v3538_v0 = vld [vmem:[#allocation8 + $0x4] ss:$16 sps:$4 sm:$0xff]   ;;  %v3540_v1 = vld [vmem:[#allocation8 + $0xc] ss:$16 sps:$4 sm:$0xff]   ;;  %v192_v38 = vlaneseq }
  0xca   :  { %2072 = vmatprep.subr.bf16.mxu0 %v3538_v0  ;;  %v3542_v2 = vld [vmem:[#allocation8] ss:$16 sps:$4 sm:$0xff]   ;;  %v3543_v3 = vld [vmem:[#allocation8 + $0x8] ss:$16 sps:$4 sm:$0xff]   ;;  %2277 = vmatprep.subr.bf16.mxu1 %v3540_v1  ;;  %v3544_v4 = vld [vmem:[#allocation8 + $0x24] ss:$16 sps:$4 sm:$0xff]  }
  0xcb   :  { %2073 = vmatpush1.bf16.msra.mxu0 %v3542_v2  ;;  %2278 = vmatpush1.bf16.msra.mxu1 %v3543_v3  ;;  %v3546_v5 = vld [vmem:[#allocation8 + $0x2c] ss:$16 sps:$4 sm:$0xff]   ;;  %v3548_v6 = vld [vmem:[#allocation8 + $0x20] ss:$16 sps:$4 sm:$0xff]   ;;  %v3549_v7 = vld [vmem:[#allocation8 + $0x28] ss:$16 sps:$4 sm:$0xff]  }
  0xcc   :  { %2074 = vmatprep.subr.bf16.mxu0 %v3544_v4  ;;  %2279 = vmatprep.subr.bf16.mxu1 %v3546_v5  ;;  %v3550_v8 = vld [vmem:[#allocation8 + $0x44] ss:$16 sps:$4 sm:$0xff]   ;;  %v3552_v9 = vld [vmem:[#allocation8 + $0x4c] ss:$16 sps:$4 sm:$0xff]   ;;  %v3554_v10 = vld [vmem:[#allocation8 + $0x40] ss:$16 sps:$4 sm:$0xff]  }
  0xcd   :  { %v3555_v11 = vld [vmem:[#allocation8 + $0x48] ss:$16 sps:$4 sm:$0xff]   ;;  %v3556_v12 = vld [vmem:[#allocation8 + $0x64] ss:$16 sps:$4 sm:$0xff]   ;;  %v3558_v13 = vld [vmem:[#allocation8 + $0x6c] ss:$16 sps:$4 sm:$0xff]  }
  0xce   :  { %v3560_v14 = vld [vmem:[#allocation8 + $0x60] ss:$16 sps:$4 sm:$0xff]   ;;  %v3561_v15 = vld [vmem:[#allocation8 + $0x68] ss:$16 sps:$4 sm:$0xff]   ;;  %v3562_v16 = vld [vmem:[#allocation8 + $0x84] ss:$16 sps:$4 sm:$0xff]  }
  0xcf   :  { %2075 = vmatpush1.bf16.msra.mxu0 %v3548_v6  ;;  %2280 = vmatpush1.bf16.msra.mxu1 %v3549_v7  ;;  %v3564_v17 = vld [vmem:[#allocation8 + $0x8c] ss:$16 sps:$4 sm:$0xff]   ;;  %v3566_v18 = vld [vmem:[#allocation8 + $0x80] ss:$16 sps:$4 sm:$0xff]   ;;  %v3567_v19 = vld [vmem:[#allocation8 + $0x88] ss:$16 sps:$4 sm:$0xff]  }
  0xd0   :  { %2076 = vmatprep.subr.bf16.mxu0 %v3550_v8  ;;  %2281 = vmatprep.subr.bf16.mxu1 %v3552_v9  ;;  %v3568_v20 = vld [vmem:[#allocation8 + $0xa4] ss:$16 sps:$4 sm:$0xff]   ;;  %v3570_v21 = vld [vmem:[#allocation8 + $0xac] ss:$16 sps:$4 sm:$0xff]   ;;  %v3572_v22 = vld [vmem:[#allocation8 + $0xa0] ss:$16 sps:$4 sm:$0xff]  }
  0xd1   :  { %v3573_v23 = vld [vmem:[#allocation8 + $0xa8] ss:$16 sps:$4 sm:$0xff]   ;;  %v3574_v24 = vld [vmem:[#allocation8 + $0xc4] ss:$16 sps:$4 sm:$0xff]   ;;  %v3576_v25 = vld [vmem:[#allocation8 + $0xcc] ss:$16 sps:$4 sm:$0xff]  }
  0xd2   :  { %v3578_v26 = vld [vmem:[#allocation8 + $0xc0] ss:$16 sps:$4 sm:$0xff]   ;;  %v3579_v27 = vld [vmem:[#allocation8 + $0xc8] ss:$16 sps:$4 sm:$0xff]   ;;  %v3580_v28 = vld [vmem:[#allocation8 + $0xe4] ss:$16 sps:$4 sm:$0xff]  }
  0xd3   :  { %2077 = vmatpush1.bf16.msra.mxu0 %v3554_v10  ;;  %2282 = vmatpush1.bf16.msra.mxu1 %v3555_v11  ;;  %v3582_v29 = vld [vmem:[#allocation8 + $0xec] ss:$16 sps:$4 sm:$0xff]   ;;  %v3584_v30 = vld [vmem:[#allocation8 + $0xe0] ss:$16 sps:$4 sm:$0xff]   ;;  %v3585_v31 = vld [vmem:[#allocation8 + $0xe8] ss:$16 sps:$4 sm:$0xff]  }
  0xd4   :  { %2078 = vmatprep.subr.bf16.mxu0 %v3556_v12  ;;  %2283 = vmatprep.subr.bf16.mxu1 %v3558_v13  ;;  %v3586_v32 = vld [vmem:[#allocation8 + $0x104] ss:$16 sps:$4 sm:$0xff]   ;;  %v3588_v33 = vld [vmem:[#allocation8 + $0x10c] ss:$16 sps:$4 sm:$0xff]   ;;  %v3590_v34 = vld [vmem:[#allocation8 + $0x100] ss:$16 sps:$4 sm:$0xff]  }
  0xd5   :  { %v3591_v35 = vld [vmem:[#allocation8 + $0x108] ss:$16 sps:$4 sm:$0xff]   ;;  %v3592_v36 = vld [vmem:[#allocation8 + $0x124] ss:$16 sps:$4 sm:$0xff]   ;;  %v3594_v37 = vld [vmem:[#allocation8 + $0x12c] ss:$16 sps:$4 sm:$0xff]  }
  0xd6   :  { %v3596_v39 = vld [vmem:[#allocation8 + $0x120] ss:$16 sps:$4 sm:$0xff]   ;;  %v3597_v40 = vld [vmem:[#allocation8 + $0x128] ss:$16 sps:$4 sm:$0xff]   ;;  %v3598_v41 = vld [vmem:[#allocation8 + $0x144] ss:$16 sps:$4 sm:$0xff]  }
  0xd7   :  { %2079 = vmatpush1.bf16.msra.mxu0 %v3560_v14  ;;  %2284 = vmatpush1.bf16.msra.mxu1 %v3561_v15  ;;  %v3600_v42 = vld [vmem:[#allocation8 + $0x14c] ss:$16 sps:$4 sm:$0xff]   ;;  %v4607_v43 = vshrl.u32 %v192_v38, 7  ;;  %v3602_v44 = vld [vmem:[#allocation8 + $0x140] ss:$16 sps:$4 sm:$0xff]   ;;  %v179_v63 = vld [vmem:[#allocation2] sm:$0xff] }
  0xd8   :  { %2080 = vmatprep.subr.bf16.mxu0 %v3562_v16  ;;  %2285 = vmatprep.subr.bf16.mxu1 %v3564_v17  ;;  %v3603_v45 = vld [vmem:[#allocation8 + $0x148] ss:$16 sps:$4 sm:$0xff]   ;;  %v3604_v46 = vld [vmem:[#allocation8 + $0x164] ss:$16 sps:$4 sm:$0xff]   ;;  %v3606_v47 = vld [vmem:[#allocation8 + $0x16c] ss:$16 sps:$4 sm:$0xff]  }
  0xd9   :  { %v3608_v48 = vld [vmem:[#allocation8 + $0x160] ss:$16 sps:$4 sm:$0xff]   ;;  %v4610_v50 = vsub.s32 1, %v4607_v43  ;;  %v4613_v51 = vsub.s32 0, %v4607_v43  ;;  %v4617_v53 = vld [vmem:[#allocation7] sm:$0xff]  ;;  %vm4381_vm0 = vmmov 0  }
  0xda   :  { %v180_v49 = vld [vmem:[#allocation2 + $0x8] sm:$0xff]  ;;  %v3609_v55 = vld [vmem:[#allocation8 + $0x168] ss:$16 sps:$4 sm:$0xff]   ;;  %v3610_v56 = vld [vmem:[#allocation8 + $0x184] ss:$16 sps:$4 sm:$0xff]   ;;  %s4382_s10 = smov [#allocation21]  }
  0xdb   :  { %2081 = vmatpush1.bf16.msra.mxu0 %v3566_v18  ;;  %2286 = vmatpush1.bf16.msra.mxu1 %v3567_v19  ;;  %v4615_v52 = vld [vmem:[#allocation5] sm:$0xff]  ;;  %v314_v54 = vpack.c.bf16 %v180_v49, %v180_v49  ;;  %v257_v58 = vrot.slane %v4617_v53, %v4610_v50  ;;  %v253_v61 = vrot.slane %v4617_v53, %v4613_v51  ;;  %v3615_v1 = vld [vmem:[#allocation8 + $0x188] ss:$16 sps:$4 sm:$0xff]   ;;  %v3616_v3 = vld [vmem:[#allocation8 + $0x1a4] ss:$16 sps:$4 sm:$0xff]   ;;  %s3029_s30 = sshll.u32 %s4382_s10, 4  ;;  %s3030_s30 = int_to_ptr.vmem [resolvable:$true] %s3029_s30 }
  0xdc   :  { %2082 = vmatprep.subr.bf16.mxu0 %v3568_v20  ;;  %2287 = vmatprep.subr.bf16.mxu1 %v3570_v21  ;;  %v199_v57 = vrot.slane %v4615_v52, %v4610_v50  ;;  %v195_v59 = vrot.slane %v4615_v52, %v4613_v51  ;;  %v3612_v60 = vld [vmem:[#allocation8 + $0x18c] ss:$16 sps:$4 sm:$0xff]   ;;  %v3614_v0 = vld [vmem:[#allocation8 + $0x180] ss:$16 sps:$4 sm:$0xff]   ;;  %v3621_v8 = vld [vmem:[#allocation8 + $0x1a8] ss:$16 sps:$4 sm:$0xff]   ;;  %v313_v21 = vpack.c.bf16 %v179_v63, %v179_v63  ;;  %p4263_p5 = scmp.lt.s32.totalorder %s3030_s30, %s3030_s30 }
  0xdd   :  { %2104 = vmatprep.mubr.bf16.mxu0 %v314_v54  ;;  %2309 = vmatprep.mubr.bf16.mxu1 %v314_v54  ;;  %v3618_v5 = vld [vmem:[#allocation8 + $0x1ac] ss:$16 sps:$4 sm:$0xff]   ;;  %v3620_v7 = vld [vmem:[#allocation8 + $0x1a0] ss:$16 sps:$4 sm:$0xff]   ;;  %v3622_v9 = vld [vmem:[#allocation8 + $0x1c4] ss:$16 sps:$4 sm:$0xff]  }
  0xde   :  { %v238_v62 = vmul.f32 %v199_v57, %v180_v49  ;;  %v237_v2 = vmul.f32 %v195_v59, %v179_v63  ;;  %v3624_v10 = vld [vmem:[#allocation8 + $0x1cc] ss:$16 sps:$4 sm:$0xff]   ;;  %v3626_v11 = vld [vmem:[#allocation8 + $0x1c0] ss:$16 sps:$4 sm:$0xff]   ;;  %v3627_v12 = vld [vmem:[#allocation8 + $0x1c8] ss:$16 sps:$4 sm:$0xff]  }
  0xdf   :  { %2083 = vmatpush1.bf16.msra.mxu0 %v3572_v22  ;;  %2288 = vmatpush1.bf16.msra.mxu1 %v3573_v23  ;;  %v3628_v13 = vld [vmem:[#allocation8 + $0x1e4] ss:$16 sps:$4 sm:$0xff]   ;;  %v3630_v14 = vld [vmem:[#allocation8 + $0x1ec] ss:$16 sps:$4 sm:$0xff]   ;;  %v3632_v15 = vld [vmem:[#allocation8 + $0x1e0] ss:$16 sps:$4 sm:$0xff]  }
  0xe0   :  { %2084 = vmatprep.subr.bf16.mxu0 %v3574_v24  ;;  %2289 = vmatprep.subr.bf16.mxu1 %v3576_v25  ;;  %v296_v4 = vadd.f32 %v257_v58, %v238_v62  ;;  %v295_v6 = vadd.f32 %v253_v61, %v237_v2  ;;  %v3633_v16 = vld [vmem:[#allocation8 + $0x1e8] ss:$16 sps:$4 sm:$0xff]   ;;  %v3636_v17 = vld [vmem:[#allocation8 + $0x204] ss:$16 sps:$4 sm:$0xff]   ;;  %v3639_v18 = vld [vmem:[#allocation8 + $0x20c] ss:$16 sps:$4 sm:$0xff]  }
  0xe1   :  { %v3634_v19 = vld [vmem:[#allocation8 + $0x200] ss:$16 sps:$4 sm:$0xff]   ;;  %v3637_v20 = vld [vmem:[#allocation8 + $0x208] ss:$16 sps:$4 sm:$0xff]   ;;  %v3642_v22 = vld [vmem:[#allocation8 + $0x224] ss:$16 sps:$4 sm:$0xff]  }
  0xe2   :  { %305 = vst [vmem:[#allocation21 + $0x8] sm:$0xff] %v296_v4  ;;  %304 = vst [vmem:[#allocation21] sm:$0xff] %v295_v6  ;;  %v3645_v23 = vld [vmem:[#allocation8 + $0x22c] ss:$16 sps:$4 sm:$0xff]   ;;  %v3640_v24 = vld [vmem:[#allocation8 + $0x220] ss:$16 sps:$4 sm:$0xff]  }
  0xe3   :  { %2085 = vmatpush1.bf16.msra.mxu0 %v3578_v26  ;;  %2290 = vmatpush1.bf16.msra.mxu1 %v3579_v27  ;;  %v3643_v25 = vld [vmem:[#allocation8 + $0x228] ss:$16 sps:$4 sm:$0xff]   ;;  %v3648_v26 = vld [vmem:[#allocation8 + $0x244] ss:$16 sps:$4 sm:$0xff]   ;;  %v3651_v27 = vld [vmem:[#allocation8 + $0x24c] ss:$16 sps:$4 sm:$0xff]  }
  0xe4   :  { %2086 = vmatprep.subr.bf16.mxu0 %v3580_v28  ;;  %2291 = vmatprep.subr.bf16.mxu1 %v3582_v29  ;;  %v3646_v28 = vld [vmem:[#allocation8 + $0x240] ss:$16 sps:$4 sm:$0xff]   ;;  %v3649_v29 = vld [vmem:[#allocation8 + $0x248] ss:$16 sps:$4 sm:$0xff]   ;;  %v3666_v38 = vld [vmem:[#allocation8 + $0x2a4] ss:$16 sps:$4 sm:$0xff]  }
  0xe5   :  { %v182_v49 = vld [vmem:[#allocation2 + $0x18] sm:$0xff]  ;;  %v3673_v58 = vld [vmem:[#allocation8 + $0x2c8] ss:$16 sps:$4 sm:$0xff]   ;;  %v3684_v4 = vld [vmem:[#allocation8 + $0x304] ss:$16 sps:$4 sm:$0xff]   ;;  %s4258_s15 = scalar_lea.vmem %s3030_s30, 1152 }
  0xe6   :  { %v316_v57 = vpack.c.bf16 %v182_v49, %v182_v49  ;;  %v3681_v61 = vld [vmem:[#allocation8 + $0x2ec] ss:$16 sps:$4 sm:$0xff]   ;;  %v4641_v63 = vld [vmem:[#allocation2 + $0x10] sm:$0xff]  ;;  %v3682_v6 = vld [vmem:[#allocation8 + $0x300] ss:$16 sps:$4 sm:$0xff]   ;;  %p4259_p4 = scmp.ne.s32.totalorder %s3030_s30, %s4258_s15  ;;  %p4264_p6 = scmp.lt.s32.totalorder %s4258_s15, %s4258_s15 }
  0xe7   :  { %2087 = vmatpush1.bf16.msra.mxu0 %v3584_v30  ;;  %2292 = vmatpush1.bf16.msra.mxu1 %v3585_v31  ;;  %v3654_v30 = vld [vmem:[#allocation8 + $0x264] ss:$16 sps:$4 sm:$0xff]   ;;  %v3657_v31 = vld [vmem:[#allocation8 + $0x26c] ss:$16 sps:$4 sm:$0xff]   ;;  %v3679_v2 = vld [vmem:[#allocation8 + $0x2e8] ss:$16 sps:$4 sm:$0xff]  }
  0xe8   :  { %2088 = vmatprep.subr.bf16.mxu0 %v3586_v32  ;;  %2293 = vmatprep.subr.bf16.mxu1 %v3588_v33  ;;  %v3652_v32 = vld [vmem:[#allocation8 + $0x260] ss:$16 sps:$4 sm:$0xff]   ;;  %v3655_v33 = vld [vmem:[#allocation8 + $0x268] ss:$16 sps:$4 sm:$0xff]   ;;  %p4265_p7 = por %p4264_p6, %p4263_p5 }
  0xea   :  { %p4266_p8 = pnand %p4265_p7, %p4259_p4 }
  0xeb   :  { %2089 = vmatpush1.bf16.msra.mxu0 %v3590_v34  ;;  %2294 = vmatpush1.bf16.msra.mxu1 %v3591_v35  ;;  %v3660_v34 = vld [vmem:[#allocation8 + $0x284] ss:$16 sps:$4 sm:$0xff]   ;;  %v3663_v35 = vld [vmem:[#allocation8 + $0x28c] ss:$16 sps:$4 sm:$0xff]  }
  0xec   :  { %2090 = vmatprep.subr.bf16.mxu0 %v3592_v36  ;;  %2295 = vmatprep.subr.bf16.mxu1 %v3594_v37  ;;  %v3658_v36 = vld [vmem:[#allocation8 + $0x280] ss:$16 sps:$4 sm:$0xff]   ;;  %v3661_v37 = vld [vmem:[#allocation8 + $0x288] ss:$16 sps:$4 sm:$0xff]  }
  0xef   :  { %2091 = vmatpush1.bf16.msra.mxu0 %v3596_v39  ;;  %2296 = vmatpush1.bf16.msra.mxu1 %v3597_v40  ;;  %v3669_v39 = vld [vmem:[#allocation8 + $0x2ac] ss:$16 sps:$4 sm:$0xff]   ;;  %v4628_v40 = vsub.s32 3, %v4607_v43 }
  0xf0   :  { %2092 = vmatprep.subr.bf16.mxu0 %v3598_v41  ;;  %2297 = vmatprep.subr.bf16.mxu1 %v3600_v42  ;;  %v3664_v41 = vld [vmem:[#allocation8 + $0x2a0] ss:$16 sps:$4 sm:$0xff]   ;;  %v3667_v42 = vld [vmem:[#allocation8 + $0x2a8] ss:$16 sps:$4 sm:$0xff]  }
  0xf3   :  { %2093 = vmatpush1.bf16.msra.mxu0 %v3602_v44  ;;  %2298 = vmatpush1.bf16.msra.mxu1 %v3603_v45  ;;  %v207_v44 = vrot.slane %v4615_v52, %v4628_v40  ;;  %v3672_v45 = vld [vmem:[#allocation8 + $0x2c4] ss:$16 sps:$4 sm:$0xff]  }
  0xf4   :  { %2094 = vmatprep.subr.bf16.mxu0 %v3604_v46  ;;  %2299 = vmatprep.subr.bf16.mxu1 %v3606_v47  ;;  %v4633_v46 = vsub.s32 2, %v4607_v43  ;;  %v3675_v47 = vld [vmem:[#allocation8 + $0x2cc] ss:$16 sps:$4 sm:$0xff]  }
  0xf6   :  { %v203_v54 = vrot.slane %v4615_v52, %v4633_v46  ;;  %v261_v59 = vrot.slane %v4617_v53, %v4633_v46 }
  0xf7   :  { %2095 = vmatpush1.bf16.msra.mxu0 %v3608_v48  ;;  %2300 = vmatpush1.bf16.msra.mxu1 %v3609_v55  ;;  %v265_v48 = vrot.slane %v4617_v53, %v4628_v40  ;;  %v3670_v55 = vld [vmem:[#allocation8 + $0x2c0] ss:$16 sps:$4 sm:$0xff]  }
  0xf8   :  { %2096 = vmatprep.subr.bf16.mxu0 %v3610_v56  ;;  %2301 = vmatprep.subr.bf16.mxu1 %v3612_v60  ;;  %v240_v56 = vmul.f32 %v207_v44, %v182_v49  ;;  %v3678_v60 = vld [vmem:[#allocation8 + $0x2e4] ss:$16 sps:$4 sm:$0xff]   ;;  %v3730_v44 = vld [vmem:[#allocation8 + $0x400] ss:$16 sps:$4 sm:$0xff]  }
  0xfa   :  { %v298_v62 = vadd.f32 %v265_v48, %v240_v56  ;;  %v3741_v48 = vld [vmem:[#allocation8 + $0x42c] ss:$16 sps:$4 sm:$0xff]   ;;  %v3736_v56 = vld [vmem:[#allocation8 + $0x420] ss:$16 sps:$4 sm:$0xff]  }
  0xfb   :  { %2097 = vmatpush1.bf16.msra.mxu0 %v3614_v0  ;;  %2302 = vmatpush1.bf16.msra.mxu1 %v3615_v1  ;;  %v239_v0 = vmul.f32 %v203_v54, %v4641_v63  ;;  %v3676_v1 = vld [vmem:[#allocation8 + $0x2e0] ss:$16 sps:$4 sm:$0xff]  }
  0xfc   :  { %2098 = vmatprep.subr.bf16.mxu0 %v3616_v3  ;;  %2303 = vmatprep.subr.bf16.mxu1 %v3618_v5  ;;  %307 = vst [vmem:[#allocation21 + $0x18] sm:$0xff] %v298_v62  ;;  %v3687_v5 = vld [vmem:[#allocation8 + $0x30c] ss:$16 sps:$4 sm:$0xff]  }
  0xfd   :  { %v297_v3 = vadd.f32 %v261_v59, %v239_v0  ;;  %v184_v54 = vld [vmem:[#allocation2 + $0x28] sm:$0xff]  ;;  %v4652_v0 = vld [vmem:[#allocation2 + $0x20] sm:$0xff] }
  0xfe   :  { %v318_v59 = vpack.c.bf16 %v184_v54, %v184_v54 }
  0xff   :  { %2099 = vmatpush1.bf16.msra.mxu0 %v3620_v7  ;;  %2304 = vmatpush1.bf16.msra.mxu1 %v3621_v8  ;;  %306 = vst [vmem:[#allocation21 + $0x10] sm:$0xff] %v297_v3  ;;  %v3685_v7 = vld [vmem:[#allocation8 + $0x308] ss:$16 sps:$4 sm:$0xff]   ;;  %v3690_v8 = vld [vmem:[#allocation8 + $0x324] ss:$16 sps:$4 sm:$0xff]  }
 0x100   :  { %2100 = vmatprep.subr.bf16.mxu0 %v3622_v9  ;;  %2305 = vmatprep.subr.bf16.mxu1 %v3624_v10  ;;  %v3693_v9 = vld [vmem:[#allocation8 + $0x32c] ss:$16 sps:$4 sm:$0xff]   ;;  %v3688_v10 = vld [vmem:[#allocation8 + $0x320] ss:$16 sps:$4 sm:$0xff]   ;;  %v3745_v3 = vld [vmem:[#allocation8 + $0x448] ss:$16 sps:$4 sm:$0xff]  }
 0x103   :  { %2101 = vmatpush1.bf16.msra.mxu0 %v3626_v11  ;;  %2306 = vmatpush1.bf16.msra.mxu1 %v3627_v12  ;;  %v3691_v11 = vld [vmem:[#allocation8 + $0x328] ss:$16 sps:$4 sm:$0xff]   ;;  %v3696_v12 = vld [vmem:[#allocation8 + $0x344] ss:$16 sps:$4 sm:$0xff]  }
 0x104   :  { %2102 = vmatprep.subr.bf16.mxu0 %v3628_v13  ;;  %2307 = vmatprep.subr.bf16.mxu1 %v3630_v14  ;;  %v3699_v13 = vld [vmem:[#allocation8 + $0x34c] ss:$16 sps:$4 sm:$0xff]   ;;  %v3694_v14 = vld [vmem:[#allocation8 + $0x340] ss:$16 sps:$4 sm:$0xff]  }
 0x107   :  { %2103 = vmatpush1.bf16.msra.mxu0 %v3632_v15  ;;  %2308 = vmatpush1.bf16.msra.mxu1 %v3633_v16  ;;  %v3697_v15 = vld [vmem:[#allocation8 + $0x348] ss:$16 sps:$4 sm:$0xff]   ;;  %v3702_v16 = vld [vmem:[#allocation8 + $0x364] ss:$16 sps:$4 sm:$0xff]  }
 0x108   :  { %2113 = vmatprep.subr.bf16.mxu0 %v3636_v17  ;;  %2318 = vmatprep.subr.bf16.mxu1 %v3639_v18  ;;  %v3705_v17 = vld [vmem:[#allocation8 + $0x36c] ss:$16 sps:$4 sm:$0xff]   ;;  %v3700_v18 = vld [vmem:[#allocation8 + $0x360] ss:$16 sps:$4 sm:$0xff]  }
 0x10a   :  { %2105 = vmatmul.mubr.bf16.vlgmr.msra.gmra.mrb[0].mxu0 %v313_v21  ;;  %2310 = vmatmul.mubr.bf16.vlgmr.msra.gmra.mrb[0].mxu1 %v313_v21  ;;  %v3711_v21 = vld [vmem:[#allocation8 + $0x38c] ss:$16 sps:$4 sm:$0xff]  }
 0x10b   :  { %2114 = vmatpush1.bf16.msra.mxu0 %v3634_v19  ;;  %2319 = vmatpush1.bf16.msra.mxu1 %v3637_v20  ;;  %v3703_v19 = vld [vmem:[#allocation8 + $0x368] ss:$16 sps:$4 sm:$0xff]   ;;  %v3708_v20 = vld [vmem:[#allocation8 + $0x384] ss:$16 sps:$4 sm:$0xff]  }
 0x10c   :  { %2115 = vmatprep.subr.bf16.mxu0 %v3642_v22  ;;  %2320 = vmatprep.subr.bf16.mxu1 %v3645_v23  ;;  %v3706_v22 = vld [vmem:[#allocation8 + $0x380] ss:$16 sps:$4 sm:$0xff]   ;;  %v3709_v23 = vld [vmem:[#allocation8 + $0x388] ss:$16 sps:$4 sm:$0xff]  }
 0x10d   :  { %2145 = vmatprep.mubr.bf16.mxu0 %v316_v57  ;;  %2350 = vmatprep.mubr.bf16.mxu1 %v316_v57  ;;  %v3739_v57 = vld [vmem:[#allocation8 + $0x428] ss:$16 sps:$4 sm:$0xff]  }
 0x10f   :  { %2116 = vmatpush1.bf16.msra.mxu0 %v3640_v24  ;;  %2321 = vmatpush1.bf16.msra.mxu1 %v3643_v25  ;;  %v3714_v24 = vld [vmem:[#allocation8 + $0x3a4] ss:$16 sps:$4 sm:$0xff]   ;;  %v3717_v25 = vld [vmem:[#allocation8 + $0x3ac] ss:$16 sps:$4 sm:$0xff]  }
 0x110   :  { %2117 = vmatprep.subr.bf16.mxu0 %v3648_v26  ;;  %2322 = vmatprep.subr.bf16.mxu1 %v3651_v27  ;;  %v3712_v26 = vld [vmem:[#allocation8 + $0x3a0] ss:$16 sps:$4 sm:$0xff]   ;;  %v3715_v27 = vld [vmem:[#allocation8 + $0x3a8] ss:$16 sps:$4 sm:$0xff]  }
 0x113   :  { %2118 = vmatpush1.bf16.msra.mxu0 %v3646_v28  ;;  %2323 = vmatpush1.bf16.msra.mxu1 %v3649_v29  ;;  %v3720_v28 = vld [vmem:[#allocation8 + $0x3c4] ss:$16 sps:$4 sm:$0xff]   ;;  %v3723_v29 = vld [vmem:[#allocation8 + $0x3cc] ss:$16 sps:$4 sm:$0xff]  }
 0x114   :  { %2119 = vmatprep.subr.bf16.mxu0 %v3654_v30  ;;  %2324 = vmatprep.subr.bf16.mxu1 %v3657_v31  ;;  %v3718_v30 = vld [vmem:[#allocation8 + $0x3c0] ss:$16 sps:$4 sm:$0xff]   ;;  %v3721_v31 = vld [vmem:[#allocation8 + $0x3c8] ss:$16 sps:$4 sm:$0xff]  }
 0x117   :  { %2120 = vmatpush1.bf16.msra.mxu0 %v3652_v32  ;;  %2325 = vmatpush1.bf16.msra.mxu1 %v3655_v33  ;;  %v3726_v32 = vld [vmem:[#allocation8 + $0x3e4] ss:$16 sps:$4 sm:$0xff]   ;;  %v3729_v33 = vld [vmem:[#allocation8 + $0x3ec] ss:$16 sps:$4 sm:$0xff]  }
 0x118   :  { %2121 = vmatprep.subr.bf16.mxu0 %v3660_v34  ;;  %2326 = vmatprep.subr.bf16.mxu1 %v3663_v35  ;;  %v214_v34 = vsub.s32 5, %v4607_v43  ;;  %v3724_v35 = vld [vmem:[#allocation8 + $0x3e0] ss:$16 sps:$4 sm:$0xff]  }
 0x11a   :  { %v273_v49 = vrot.slane %v4617_v53, %v214_v34 }
 0x11b   :  { %2122 = vmatpush1.bf16.msra.mxu0 %v3658_v36  ;;  %2327 = vmatpush1.bf16.msra.mxu1 %v3661_v37  ;;  %v3727_v36 = vld [vmem:[#allocation8 + $0x3e8] ss:$16 sps:$4 sm:$0xff]   ;;  %v3732_v37 = vld [vmem:[#allocation8 + $0x404] ss:$16 sps:$4 sm:$0xff]  }
 0x11c   :  { %2123 = vmatprep.subr.bf16.mxu0 %v3666_v38  ;;  %2328 = vmatprep.subr.bf16.mxu1 %v3669_v39  ;;  %v3735_v38 = vld [vmem:[#allocation8 + $0x40c] ss:$16 sps:$4 sm:$0xff]   ;;  %v210_v39 = vsub.s32 4, %v4607_v43 }
 0x11e   :  { %v269_v62 = vrot.slane %v4617_v53, %v210_v39 }
 0x11f   :  { %2124 = vmatpush1.bf16.msra.mxu0 %v3664_v41  ;;  %2329 = vmatpush1.bf16.msra.mxu1 %v3667_v42  ;;  %v315_v41 = vpack.c.bf16 %v4641_v63, %v4641_v63  ;;  %v215_v42 = vrot.slane %v4615_v52, %v214_v34  ;;  %v3795_v34 = vld [vmem:[#allocation8 + $0x54c] ss:$16 sps:$4 sm:$0xff]  }
 0x120   :  { %2125 = vmatprep.subr.bf16.mxu0 %v3672_v45  ;;  %2330 = vmatprep.subr.bf16.mxu1 %v3675_v47  ;;  %v3733_v45 = vld [vmem:[#allocation8 + $0x408] ss:$16 sps:$4 sm:$0xff]   ;;  %v3738_v47 = vld [vmem:[#allocation8 + $0x424] ss:$16 sps:$4 sm:$0xff]  }
 0x123   :  { %2126 = vmatpush1.bf16.msra.mxu0 %v3670_v55  ;;  %2331 = vmatpush1.bf16.msra.mxu1 %v3673_v58  ;;  %v211_v55 = vrot.slane %v4615_v52, %v210_v39  ;;  %v242_v58 = vmul.f32 %v215_v42, %v184_v54  ;;  %v3801_v39 = vld [vmem:[#allocation8 + $0x56c] ss:$16 sps:$4 sm:$0xff]  }
 0x124   :  { %2127 = vmatprep.subr.bf16.mxu0 %v3678_v60  ;;  %2332 = vmatprep.subr.bf16.mxu1 %v3681_v61  ;;  %v3744_v60 = vld [vmem:[#allocation8 + $0x444] ss:$16 sps:$4 sm:$0xff]   ;;  %v3747_v61 = vld [vmem:[#allocation8 + $0x44c] ss:$16 sps:$4 sm:$0xff]  }
 0x125   :  { %v300_v63 = vadd.f32 %v273_v49, %v242_v58  ;;  %v3807_v49 = vld [vmem:[#allocation8 + $0x58c] ss:$16 sps:$4 sm:$0xff]   ;;  %v3802_v58 = vld [vmem:[#allocation8 + $0x580] ss:$16 sps:$4 sm:$0xff]  }
 0x126   :  { %v186_v54 = vld [vmem:[#allocation2 + $0x38] sm:$0xff] }
 0x127   :  { %2128 = vmatpush1.bf16.msra.mxu0 %v3676_v1  ;;  %2333 = vmatpush1.bf16.msra.mxu1 %v3679_v2  ;;  %v241_v1 = vmul.f32 %v211_v55, %v4652_v0  ;;  %v3742_v2 = vld [vmem:[#allocation8 + $0x440] ss:$16 sps:$4 sm:$0xff]   ;;  %309 = vst [vmem:[#allocation21 + $0x28] sm:$0xff] %v300_v63 }
 0x128   :  { %2129 = vmatprep.subr.bf16.mxu0 %v3684_v4  ;;  %2334 = vmatprep.subr.bf16.mxu1 %v3687_v5  ;;  %v3750_v4 = vld [vmem:[#allocation8 + $0x464] ss:$16 sps:$4 sm:$0xff]   ;;  %v4014_v55 = vld [vmem:[#allocation5] sm:$0xff] }
 0x129   :  { %v299_v5 = vadd.f32 %v269_v62, %v241_v1  ;;  %v3810_v62 = vld [vmem:[#allocation8 + $0x5a4] ss:$16 sps:$4 sm:$0xff]  }
 0x12b   :  { %2130 = vmatpush1.bf16.msra.mxu0 %v3682_v6  ;;  %2335 = vmatpush1.bf16.msra.mxu1 %v3685_v7  ;;  %v3753_v6 = vld [vmem:[#allocation8 + $0x46c] ss:$16 sps:$4 sm:$0xff]   ;;  %308 = vst [vmem:[#allocation21 + $0x20] sm:$0xff] %v299_v5  ;;  %v3748_v7 = vld [vmem:[#allocation8 + $0x460] ss:$16 sps:$4 sm:$0xff]  }
 0x12c   :  { %2131 = vmatprep.subr.bf16.mxu0 %v3690_v8  ;;  %2336 = vmatprep.subr.bf16.mxu1 %v3693_v9  ;;  %v3751_v8 = vld [vmem:[#allocation8 + $0x468] ss:$16 sps:$4 sm:$0xff]   ;;  %v3756_v9 = vld [vmem:[#allocation8 + $0x484] ss:$16 sps:$4 sm:$0xff]   ;;  %v3819_v5 = vld [vmem:[#allocation8 + $0x5cc] ss:$16 sps:$4 sm:$0xff]  }
 0x12f   :  { %2132 = vmatpush1.bf16.msra.mxu0 %v3688_v10  ;;  %2337 = vmatpush1.bf16.msra.mxu1 %v3691_v11  ;;  %v3759_v10 = vld [vmem:[#allocation8 + $0x48c] ss:$16 sps:$4 sm:$0xff]   ;;  %v3754_v11 = vld [vmem:[#allocation8 + $0x480] ss:$16 sps:$4 sm:$0xff]  }
 0x130   :  { %2133 = vmatprep.subr.bf16.mxu0 %v3696_v12  ;;  %2338 = vmatprep.subr.bf16.mxu1 %v3699_v13  ;;  %v3757_v12 = vld [vmem:[#allocation8 + $0x488] ss:$16 sps:$4 sm:$0xff]   ;;  %v3762_v13 = vld [vmem:[#allocation8 + $0x4a4] ss:$16 sps:$4 sm:$0xff]  }
 0x133   :  { %2134 = vmatpush1.bf16.msra.mxu0 %v3694_v14  ;;  %2339 = vmatpush1.bf16.msra.mxu1 %v3697_v15  ;;  %v3765_v14 = vld [vmem:[#allocation8 + $0x4ac] ss:$16 sps:$4 sm:$0xff]   ;;  %v3760_v15 = vld [vmem:[#allocation8 + $0x4a0] ss:$16 sps:$4 sm:$0xff]  }
 0x134   :  { %2135 = vmatprep.subr.bf16.mxu0 %v3702_v16  ;;  %2340 = vmatprep.subr.bf16.mxu1 %v3705_v17  ;;  %v3763_v16 = vld [vmem:[#allocation8 + $0x4a8] ss:$16 sps:$4 sm:$0xff]   ;;  %v3768_v17 = vld [vmem:[#allocation8 + $0x4c4] ss:$16 sps:$4 sm:$0xff]  }
 0x137   :  { %2136 = vmatpush1.bf16.msra.mxu0 %v3700_v18  ;;  %2341 = vmatpush1.bf16.msra.mxu1 %v3703_v19  ;;  %v3771_v18 = vld [vmem:[#allocation8 + $0x4cc] ss:$16 sps:$4 sm:$0xff]   ;;  %v3766_v19 = vld [vmem:[#allocation8 + $0x4c0] ss:$16 sps:$4 sm:$0xff]  }
 0x138   :  { %2137 = vmatprep.subr.bf16.mxu0 %v3708_v20  ;;  %2342 = vmatprep.subr.bf16.mxu1 %v3711_v21  ;;  %v3769_v20 = vld [vmem:[#allocation8 + $0x4c8] ss:$16 sps:$4 sm:$0xff]   ;;  %v3774_v21 = vld [vmem:[#allocation8 + $0x4e4] ss:$16 sps:$4 sm:$0xff]  }
 0x13b   :  { %2138 = vmatpush1.bf16.msra.mxu0 %v3706_v22  ;;  %2343 = vmatpush1.bf16.msra.mxu1 %v3709_v23  ;;  %v3777_v22 = vld [vmem:[#allocation8 + $0x4ec] ss:$16 sps:$4 sm:$0xff]   ;;  %v3772_v23 = vld [vmem:[#allocation8 + $0x4e0] ss:$16 sps:$4 sm:$0xff]  }
 0x13c   :  { %2139 = vmatprep.subr.bf16.mxu0 %v3714_v24  ;;  %2344 = vmatprep.subr.bf16.mxu1 %v3717_v25  ;;  %v3775_v24 = vld [vmem:[#allocation8 + $0x4e8] ss:$16 sps:$4 sm:$0xff]   ;;  %v3780_v25 = vld [vmem:[#allocation8 + $0x504] ss:$16 sps:$4 sm:$0xff]  }
 0x13f   :  { %2140 = vmatpush1.bf16.msra.mxu0 %v3712_v26  ;;  %2345 = vmatpush1.bf16.msra.mxu1 %v3715_v27  ;;  %v3783_v26 = vld [vmem:[#allocation8 + $0x50c] ss:$16 sps:$4 sm:$0xff]   ;;  %v3778_v27 = vld [vmem:[#allocation8 + $0x500] ss:$16 sps:$4 sm:$0xff]  }
 0x140   :  { %2141 = vmatprep.subr.bf16.mxu0 %v3720_v28  ;;  %2346 = vmatprep.subr.bf16.mxu1 %v3723_v29  ;;  %v3781_v28 = vld [vmem:[#allocation8 + $0x508] ss:$16 sps:$4 sm:$0xff]   ;;  %v3786_v29 = vld [vmem:[#allocation8 + $0x524] ss:$16 sps:$4 sm:$0xff]  }
 0x143   :  { %2142 = vmatpush1.bf16.msra.mxu0 %v3718_v30  ;;  %2347 = vmatpush1.bf16.msra.mxu1 %v3721_v31  ;;  %v3789_v30 = vld [vmem:[#allocation8 + $0x52c] ss:$16 sps:$4 sm:$0xff]   ;;  %v3784_v31 = vld [vmem:[#allocation8 + $0x520] ss:$16 sps:$4 sm:$0xff]  }
 0x144   :  { %2143 = vmatprep.subr.bf16.mxu0 %v3726_v32  ;;  %2348 = vmatprep.subr.bf16.mxu1 %v3729_v33  ;;  %v3787_v32 = vld [vmem:[#allocation8 + $0x528] ss:$16 sps:$4 sm:$0xff]   ;;  %v3792_v33 = vld [vmem:[#allocation8 + $0x544] ss:$16 sps:$4 sm:$0xff]  }
 0x147   :  { %2144 = vmatpush1.bf16.msra.mxu0 %v3724_v35  ;;  %2349 = vmatpush1.bf16.msra.mxu1 %v3727_v36  ;;  %v222_v35 = vsub.s32 7, %v4607_v43  ;;  %v3790_v36 = vld [vmem:[#allocation8 + $0x540] ss:$16 sps:$4 sm:$0xff]  }
 0x148   :  { %2154 = vmatprep.subr.bf16.mxu0 %v3732_v37  ;;  %2359 = vmatprep.subr.bf16.mxu1 %v3735_v38  ;;  %v3793_v37 = vld [vmem:[#allocation8 + $0x548] ss:$16 sps:$4 sm:$0xff]   ;;  %v3798_v38 = vld [vmem:[#allocation8 + $0x564] ss:$16 sps:$4 sm:$0xff]  }
 0x149   :  { %v223_v42 = vrot.slane %v4615_v52, %v222_v35 }
 0x14a   :  { %2146 = vmatmul.mubr.bf16.vlgmr.msra.gmra.mrb[0].mxu0 %v315_v41  ;;  %2351 = vmatmul.mubr.bf16.vlgmr.msra.gmra.mrb[0].mxu1 %v315_v41  ;;  %v218_v41 = vsub.s32 6, %v4607_v43  ;;  %v3805_v43 = vld [vmem:[#allocation8 + $0x588] ss:$16 sps:$4 sm:$0xff]  }
 0x14b   :  { %2155 = vmatpush1.bf16.msra.mxu0 %v3730_v44  ;;  %2360 = vmatpush1.bf16.msra.mxu1 %v3733_v45  ;;  %v3796_v44 = vld [vmem:[#allocation8 + $0x560] ss:$16 sps:$4 sm:$0xff]   ;;  %v3799_v45 = vld [vmem:[#allocation8 + $0x568] ss:$16 sps:$4 sm:$0xff]  }
 0x14c   :  { %2156 = vmatprep.subr.bf16.mxu0 %v3738_v47  ;;  %2361 = vmatprep.subr.bf16.mxu1 %v3741_v48  ;;  %v3804_v47 = vld [vmem:[#allocation8 + $0x584] ss:$16 sps:$4 sm:$0xff]   ;;  %v281_v48 = vrot.slane %v4617_v53, %v222_v35  ;;  %v3813_v53 = vld [vmem:[#allocation8 + $0x5ac] ss:$16 sps:$4 sm:$0xff]  }
 0x14d   :  { %2186 = vmatprep.mubr.bf16.mxu0 %v318_v59  ;;  %2391 = vmatprep.mubr.bf16.mxu1 %v318_v59  ;;  %v4015_v59 = vld [vmem:[#allocation7] sm:$0xff] }
 0x14e   :  { %v3855_v35 = vld [vmem:[#allocation8 + $0x68c] ss:$16 sps:$4 sm:$0xff]  }
 0x14f   :  { %2157 = vmatpush1.bf16.msra.mxu0 %v3736_v56  ;;  %2362 = vmatpush1.bf16.msra.mxu1 %v3739_v57  ;;  %v219_v56 = vrot.slane %v4014_v55, %v218_v41  ;;  %v244_v57 = vmul.f32 %v223_v42, %v186_v54  ;;  %v3859_v42 = vld [vmem:[#allocation8 + $0x6a8] ss:$16 sps:$4 sm:$0xff]   ;;  %v3868_v55 = vld [vmem:[#allocation8 + $0x6e0] ss:$16 sps:$4 sm:$0xff]  }
 0x150   :  { %2158 = vmatprep.subr.bf16.mxu0 %v3744_v60  ;;  %2363 = vmatprep.subr.bf16.mxu1 %v3747_v61  ;;  %v277_v60 = vrot.slane %v4015_v59, %v218_v41  ;;  %v4659_v61 = vld [vmem:[#allocation2 + $0x30] sm:$0xff]  ;;  %v3856_v41 = vld [vmem:[#allocation8 + $0x6a0] ss:$16 sps:$4 sm:$0xff]  }
 0x151   :  { %v302_v52 = vadd.f32 %v281_v48, %v244_v57  ;;  %v243_v63 = vmul.f32 %v219_v56, %v4659_v61  ;;  %v3865_v48 = vld [vmem:[#allocation8 + $0x6c8] ss:$16 sps:$4 sm:$0xff]   ;;  %v3876_v57 = vld [vmem:[#allocation8 + $0x704] ss:$16 sps:$4 sm:$0xff]   ;;  %v3874_v59 = vld [vmem:[#allocation8 + $0x700] ss:$16 sps:$4 sm:$0xff]  }
 0x152   :  { %v3871_v56 = vld [vmem:[#allocation8 + $0x6e8] ss:$16 sps:$4 sm:$0xff]  }
 0x153   :  { %2159 = vmatpush1.bf16.msra.mxu0 %v3742_v2  ;;  %2364 = vmatpush1.bf16.msra.mxu1 %v3745_v3  ;;  %311 = vst [vmem:[#allocation21 + $0x38] sm:$0xff] %v302_v52  ;;  %v301_v1 = vadd.f32 %v277_v60, %v243_v63  ;;  %v3808_v2 = vld [vmem:[#allocation8 + $0x5a0] ss:$16 sps:$4 sm:$0xff]   ;;  %v3811_v3 = vld [vmem:[#allocation8 + $0x5a8] ss:$16 sps:$4 sm:$0xff]  }
 0x154   :  { %2160 = vmatprep.subr.bf16.mxu0 %v3750_v4  ;;  %2365 = vmatprep.subr.bf16.mxu1 %v3753_v6  ;;  %v3816_v4 = vld [vmem:[#allocation8 + $0x5c4] ss:$16 sps:$4 sm:$0xff]   ;;  %v3814_v6 = vld [vmem:[#allocation8 + $0x5c0] ss:$16 sps:$4 sm:$0xff]   ;;  %v3877_v60 = vld [vmem:[#allocation8 + $0x708] ss:$16 sps:$4 sm:$0xff]  }
 0x155   :  { %310 = vst [vmem:[#allocation21 + $0x30] sm:$0xff] %v301_v1  ;;  %v3885_v52 = vld [vmem:[#allocation8 + $0x72c] ss:$16 sps:$4 sm:$0xff]   ;;  %v3888_v63 = vld [vmem:[#allocation8 + $0x744] ss:$16 sps:$4 sm:$0xff]  }
 0x156   :  { %v3891_v1 = vld [vmem:[#allocation8 + $0x74c] ss:$16 sps:$4 sm:$0xff]  }
 0x157   :  { %2161 = vmatpush1.bf16.msra.mxu0 %v3748_v7  ;;  %2366 = vmatpush1.bf16.msra.mxu1 %v3751_v8  ;;  %v3817_v7 = vld [vmem:[#allocation8 + $0x5c8] ss:$16 sps:$4 sm:$0xff]   ;;  %v3822_v8 = vld [vmem:[#allocation8 + $0x5e4] ss:$16 sps:$4 sm:$0xff]  }
 0x158   :  { %2162 = vmatprep.subr.bf16.mxu0 %v3756_v9  ;;  %2367 = vmatprep.subr.bf16.mxu1 %v3759_v10  ;;  %v3825_v9 = vld [vmem:[#allocation8 + $0x5ec] ss:$16 sps:$4 sm:$0xff]   ;;  %v3820_v10 = vld [vmem:[#allocation8 + $0x5e0] ss:$16 sps:$4 sm:$0xff]  }
 0x15b   :  { %2163 = vmatpush1.bf16.msra.mxu0 %v3754_v11  ;;  %2368 = vmatpush1.bf16.msra.mxu1 %v3757_v12  ;;  %v3823_v11 = vld [vmem:[#allocation8 + $0x5e8] ss:$16 sps:$4 sm:$0xff]   ;;  %v3828_v12 = vld [vmem:[#allocation8 + $0x604] ss:$16 sps:$4 sm:$0xff]  }
 0x15c   :  { %2164 = vmatprep.subr.bf16.mxu0 %v3762_v13  ;;  %2369 = vmatprep.subr.bf16.mxu1 %v3765_v14  ;;  %v3831_v13 = vld [vmem:[#allocation8 + $0x60c] ss:$16 sps:$4 sm:$0xff]   ;;  %v317_v14 = vpack.c.bf16 %v4652_v0, %v4652_v0 }
 0x15f   :  { %2165 = vmatpush1.bf16.msra.mxu0 %v3760_v15  ;;  %2370 = vmatpush1.bf16.msra.mxu1 %v3763_v16  ;;  %v3826_v15 = vld [vmem:[#allocation8 + $0x600] ss:$16 sps:$4 sm:$0xff]   ;;  %v3829_v16 = vld [vmem:[#allocation8 + $0x608] ss:$16 sps:$4 sm:$0xff]  }
 0x160   :  { %2166 = vmatprep.subr.bf16.mxu0 %v3768_v17  ;;  %2371 = vmatprep.subr.bf16.mxu1 %v3771_v18  ;;  %v3834_v17 = vld [vmem:[#allocation8 + $0x624] ss:$16 sps:$4 sm:$0xff]   ;;  %v3837_v18 = vld [vmem:[#allocation8 + $0x62c] ss:$16 sps:$4 sm:$0xff]  }
 0x163   :  { %2167 = vmatpush1.bf16.msra.mxu0 %v3766_v19  ;;  %2372 = vmatpush1.bf16.msra.mxu1 %v3769_v20  ;;  %v3832_v19 = vld [vmem:[#allocation8 + $0x620] ss:$16 sps:$4 sm:$0xff]   ;;  %v3835_v20 = vld [vmem:[#allocation8 + $0x628] ss:$16 sps:$4 sm:$0xff]  }
 0x164   :  { %2168 = vmatprep.subr.bf16.mxu0 %v3774_v21  ;;  %2373 = vmatprep.subr.bf16.mxu1 %v3777_v22  ;;  %v320_v21 = vpack.c.bf16 %v186_v54, %v186_v54  ;;  %v3840_v22 = vld [vmem:[#allocation8 + $0x644] ss:$16 sps:$4 sm:$0xff]   ;;  %v3873_v54 = vld [vmem:[#allocation8 + $0x6ec] ss:$16 sps:$4 sm:$0xff]  }
 0x167   :  { %2169 = vmatpush1.bf16.msra.mxu0 %v3772_v23  ;;  %2374 = vmatpush1.bf16.msra.mxu1 %v3775_v24  ;;  %v4664_v23 = vld [vmem:[#allocation2 + $0x40] sm:$0xff]  ;;  %v3074_v24 = vld [vmem:[#allocation5 + $0x8] ss:$0 sm:$0xff] }
 0x168   :  { %2170 = vmatprep.subr.bf16.mxu0 %v3780_v25  ;;  %2375 = vmatprep.subr.bf16.mxu1 %v3783_v26  ;;  %v245_v0 = vmul.f32 %v3074_v24, %v4664_v23  ;;  %v3075_v25 = vld [vmem:[#allocation7 + $0x8] ss:$0 sm:$0xff]  ;;  %v3919_v24 = vld [vmem:[#allocation8 + $0x7e8] ss:$16 sps:$4 sm:$0xff]  }
 0x169   :  { %v3843_v26 = vld [vmem:[#allocation8 + $0x64c] ss:$16 sps:$4 sm:$0xff]  }
 0x16b   :  { %2171 = vmatpush1.bf16.msra.mxu0 %v3778_v27  ;;  %2376 = vmatpush1.bf16.msra.mxu1 %v3781_v28  ;;  %v3838_v27 = vld [vmem:[#allocation8 + $0x640] ss:$16 sps:$4 sm:$0xff]   ;;  %v303_v28 = vadd.f32 %v3075_v25, %v245_v0  ;;  %v3924_v0 = vld [vmem:[#allocation8 + $0x804] ss:$16 sps:$4 sm:$0xff]   ;;  %v3927_v25 = vld [vmem:[#allocation8 + $0x80c] ss:$16 sps:$4 sm:$0xff]  }
 0x16c   :  { %2172 = vmatprep.subr.bf16.mxu0 %v3786_v29  ;;  %2377 = vmatprep.subr.bf16.mxu1 %v3789_v30  ;;  %v3841_v29 = vld [vmem:[#allocation8 + $0x648] ss:$16 sps:$4 sm:$0xff]   ;;  %v3846_v30 = vld [vmem:[#allocation8 + $0x664] ss:$16 sps:$4 sm:$0xff]  }
 0x16d   :  { %312 = vst [vmem:[#allocation21 + $0x40] sm:$0xff] %v303_v28  ;;  %v3925_v28 = vld [vmem:[#allocation8 + $0x808] ss:$16 sps:$4 sm:$0xff]  }
 0x16f   :  { %2173 = vmatpush1.bf16.msra.mxu0 %v3784_v31  ;;  %2378 = vmatpush1.bf16.msra.mxu1 %v3787_v32  ;;  %v3849_v31 = vld [vmem:[#allocation8 + $0x66c] ss:$16 sps:$4 sm:$0xff]   ;;  %v3844_v32 = vld [vmem:[#allocation8 + $0x660] ss:$16 sps:$4 sm:$0xff]  }
 0x170   :  { %2174 = vmatprep.subr.bf16.mxu0 %v3792_v33  ;;  %2379 = vmatprep.subr.bf16.mxu1 %v3795_v34  ;;  %v3847_v33 = vld [vmem:[#allocation8 + $0x668] ss:$16 sps:$4 sm:$0xff]   ;;  %v3852_v34 = vld [vmem:[#allocation8 + $0x684] ss:$16 sps:$4 sm:$0xff]  }
 0x173   :  { %2175 = vmatpush1.bf16.msra.mxu0 %v3790_v36  ;;  %2380 = vmatpush1.bf16.msra.mxu1 %v3793_v37  ;;  %v3850_v36 = vld [vmem:[#allocation8 + $0x680] ss:$16 sps:$4 sm:$0xff]   ;;  %v3853_v37 = vld [vmem:[#allocation8 + $0x688] ss:$16 sps:$4 sm:$0xff]  }
 0x174   :  { %2176 = vmatprep.subr.bf16.mxu0 %v3798_v38  ;;  %2381 = vmatprep.subr.bf16.mxu1 %v3801_v39  ;;  %v3858_v38 = vld [vmem:[#allocation8 + $0x6a4] ss:$16 sps:$4 sm:$0xff]   ;;  %v3861_v39 = vld [vmem:[#allocation8 + $0x6ac] ss:$16 sps:$4 sm:$0xff]  }
 0x177   :  { %2177 = vmatpush1.bf16.msra.mxu0 %v3796_v44  ;;  %2382 = vmatpush1.bf16.msra.mxu1 %v3799_v45  ;;  %v3864_v44 = vld [vmem:[#allocation8 + $0x6c4] ss:$16 sps:$4 sm:$0xff]   ;;  %v3867_v45 = vld [vmem:[#allocation8 + $0x6cc] ss:$16 sps:$4 sm:$0xff]  }
 0x178   :  { %2178 = vmatprep.subr.bf16.mxu0 %v3804_v47  ;;  %2383 = vmatprep.subr.bf16.mxu1 %v3807_v49  ;;  %v3862_v47 = vld [vmem:[#allocation8 + $0x6c0] ss:$16 sps:$4 sm:$0xff]   ;;  %v3870_v49 = vld [vmem:[#allocation8 + $0x6e4] ss:$16 sps:$4 sm:$0xff]  }
 0x17b   :  { %2179 = vmatpush1.bf16.msra.mxu0 %v3802_v58  ;;  %2384 = vmatpush1.bf16.msra.mxu1 %v3805_v43  ;;  %v3879_v58 = vld [vmem:[#allocation8 + $0x70c] ss:$16 sps:$4 sm:$0xff]   ;;  %v3882_v43 = vld [vmem:[#allocation8 + $0x724] ss:$16 sps:$4 sm:$0xff]  }
 0x17c   :  { %2180 = vmatprep.subr.bf16.mxu0 %v3810_v62  ;;  %2385 = vmatprep.subr.bf16.mxu1 %v3813_v53  ;;  %v3880_v62 = vld [vmem:[#allocation8 + $0x720] ss:$16 sps:$4 sm:$0xff]   ;;  %v3883_v53 = vld [vmem:[#allocation8 + $0x728] ss:$16 sps:$4 sm:$0xff]  }
 0x17f   :  { %2181 = vmatpush1.bf16.msra.mxu0 %v3808_v2  ;;  %2386 = vmatpush1.bf16.msra.mxu1 %v3811_v3  ;;  %v3886_v2 = vld [vmem:[#allocation8 + $0x740] ss:$16 sps:$4 sm:$0xff]   ;;  %v3889_v3 = vld [vmem:[#allocation8 + $0x748] ss:$16 sps:$4 sm:$0xff]  }
 0x180   :  { %2182 = vmatprep.subr.bf16.mxu0 %v3816_v4  ;;  %2387 = vmatprep.subr.bf16.mxu1 %v3819_v5  ;;  %v3894_v4 = vld [vmem:[#allocation8 + $0x764] ss:$16 sps:$4 sm:$0xff]   ;;  %v3897_v5 = vld [vmem:[#allocation8 + $0x76c] ss:$16 sps:$4 sm:$0xff]  }
 0x183   :  { %2183 = vmatpush1.bf16.msra.mxu0 %v3814_v6  ;;  %2388 = vmatpush1.bf16.msra.mxu1 %v3817_v7  ;;  %v3892_v6 = vld [vmem:[#allocation8 + $0x760] ss:$16 sps:$4 sm:$0xff]   ;;  %v3895_v7 = vld [vmem:[#allocation8 + $0x768] ss:$16 sps:$4 sm:$0xff]  }
 0x184   :  { %2184 = vmatprep.subr.bf16.mxu0 %v3822_v8  ;;  %2389 = vmatprep.subr.bf16.mxu1 %v3825_v9  ;;  %v3900_v8 = vld [vmem:[#allocation8 + $0x784] ss:$16 sps:$4 sm:$0xff]   ;;  %v3903_v9 = vld [vmem:[#allocation8 + $0x78c] ss:$16 sps:$4 sm:$0xff]  }
 0x187   :  { %2185 = vmatpush1.bf16.msra.mxu0 %v3820_v10  ;;  %2390 = vmatpush1.bf16.msra.mxu1 %v3823_v11  ;;  %v3898_v10 = vld [vmem:[#allocation8 + $0x780] ss:$16 sps:$4 sm:$0xff]   ;;  %v3901_v11 = vld [vmem:[#allocation8 + $0x788] ss:$16 sps:$4 sm:$0xff]  }
 0x188   :  { %2195 = vmatprep.subr.bf16.mxu0 %v3828_v12  ;;  %2400 = vmatprep.subr.bf16.mxu1 %v3831_v13  ;;  %v3906_v12 = vld [vmem:[#allocation8 + $0x7a4] ss:$16 sps:$4 sm:$0xff]   ;;  %v3909_v13 = vld [vmem:[#allocation8 + $0x7ac] ss:$16 sps:$4 sm:$0xff]  }
 0x18a   :  { %2187 = vmatmul.mubr.bf16.vlgmr.msra.gmra.mrb[0].mxu0 %v317_v14  ;;  %2392 = vmatmul.mubr.bf16.vlgmr.msra.gmra.mrb[0].mxu1 %v317_v14  ;;  %v3904_v14 = vld [vmem:[#allocation8 + $0x7a0] ss:$16 sps:$4 sm:$0xff]  }
 0x18b   :  { %2196 = vmatpush1.bf16.msra.mxu0 %v3826_v15  ;;  %2401 = vmatpush1.bf16.msra.mxu1 %v3829_v16  ;;  %v3907_v15 = vld [vmem:[#allocation8 + $0x7a8] ss:$16 sps:$4 sm:$0xff]   ;;  %v3912_v16 = vld [vmem:[#allocation8 + $0x7c4] ss:$16 sps:$4 sm:$0xff]  }
 0x18c   :  { %2197 = vmatprep.subr.bf16.mxu0 %v3834_v17  ;;  %2402 = vmatprep.subr.bf16.mxu1 %v3837_v18  ;;  %v3915_v17 = vld [vmem:[#allocation8 + $0x7cc] ss:$16 sps:$4 sm:$0xff]   ;;  %v3910_v18 = vld [vmem:[#allocation8 + $0x7c0] ss:$16 sps:$4 sm:$0xff]  }
 0x18d   :  { %2227 = vmatprep.mubr.bf16.mxu0 %v320_v21  ;;  %2432 = vmatprep.mubr.bf16.mxu1 %v320_v21  ;;  %v3921_v21 = vld [vmem:[#allocation8 + $0x7ec] ss:$16 sps:$4 sm:$0xff]  }
 0x18f   :  { %2198 = vmatpush1.bf16.msra.mxu0 %v3832_v19  ;;  %2403 = vmatpush1.bf16.msra.mxu1 %v3835_v20  ;;  %v3913_v19 = vld [vmem:[#allocation8 + $0x7c8] ss:$16 sps:$4 sm:$0xff]   ;;  %v3918_v20 = vld [vmem:[#allocation8 + $0x7e4] ss:$16 sps:$4 sm:$0xff]  }
 0x190   :  { %2199 = vmatprep.subr.bf16.mxu0 %v3840_v22  ;;  %2404 = vmatprep.subr.bf16.mxu1 %v3843_v26  ;;  %v3916_v22 = vld [vmem:[#allocation8 + $0x7e0] ss:$16 sps:$4 sm:$0xff]   ;;  %v319_v26 = vpack.c.bf16 %v4659_v61, %v4659_v61 }
 0x191   :  { %v3934_v61 = vld [vmem:[#allocation8 + $0x840] ss:$16 sps:$4 sm:$0xff]  }
 0x193   :  { %2200 = vmatpush1.bf16.msra.mxu0 %v3838_v27  ;;  %2405 = vmatpush1.bf16.msra.mxu1 %v3841_v29  ;;  %v3922_v27 = vld [vmem:[#allocation8 + $0x800] ss:$16 sps:$4 sm:$0xff]   ;;  %v3930_v29 = vld [vmem:[#allocation8 + $0x824] ss:$16 sps:$4 sm:$0xff]  }
 0x194   :  { %2201 = vmatprep.subr.bf16.mxu0 %v3846_v30  ;;  %2406 = vmatprep.subr.bf16.mxu1 %v3849_v31  ;;  %v3933_v30 = vld [vmem:[#allocation8 + $0x82c] ss:$16 sps:$4 sm:$0xff]   ;;  %v3928_v31 = vld [vmem:[#allocation8 + $0x820] ss:$16 sps:$4 sm:$0xff]  }
 0x197   :  { %2202 = vmatpush1.bf16.msra.mxu0 %v3844_v32  ;;  %2407 = vmatpush1.bf16.msra.mxu1 %v3847_v33  ;;  %v3931_v32 = vld [vmem:[#allocation8 + $0x828] ss:$16 sps:$4 sm:$0xff]   ;;  %v3936_v33 = vld [vmem:[#allocation8 + $0x844] ss:$16 sps:$4 sm:$0xff]  }
 0x198   :  { %2203 = vmatprep.subr.bf16.mxu0 %v3852_v34  ;;  %2408 = vmatprep.subr.bf16.mxu1 %v3855_v35  ;;  %v3939_v34 = vld [vmem:[#allocation8 + $0x84c] ss:$16 sps:$4 sm:$0xff]   ;;  %v4379_v35 = vmov 0  }
 0x19b   :  { %2204 = vmatpush1.bf16.msra.mxu0 %v3850_v36  ;;  %2409 = vmatpush1.bf16.msra.mxu1 %v3853_v37  ;;  %v3937_v36 = vld [vmem:[#allocation8 + $0x848] ss:$16 sps:$4 sm:$0xff]   ;;  %v3942_v37 = vld [vmem:[#allocation8 + $0x864] ss:$16 sps:$4 sm:$0xff]  }
 0x19c   :  { %2205 = vmatprep.subr.bf16.mxu0 %v3858_v38  ;;  %2410 = vmatprep.subr.bf16.mxu1 %v3861_v39  ;;  %v3945_v38 = vld [vmem:[#allocation8 + $0x86c] ss:$16 sps:$4 sm:$0xff]   ;;  %v3940_v39 = vld [vmem:[#allocation8 + $0x860] ss:$16 sps:$4 sm:$0xff]  }
 0x19f   :  { %2206 = vmatpush1.bf16.msra.mxu0 %v3856_v41  ;;  %2411 = vmatpush1.bf16.msra.mxu1 %v3859_v42  ;;  %v3943_v41 = vld [vmem:[#allocation8 + $0x868] ss:$16 sps:$4 sm:$0xff]   ;;  %v3948_v42 = vld [vmem:[#allocation8 + $0x884] ss:$16 sps:$4 sm:$0xff]  }
 0x1a0   :  { %2207 = vmatprep.subr.bf16.mxu0 %v3864_v44  ;;  %2412 = vmatprep.subr.bf16.mxu1 %v3867_v45  ;;  %v3951_v44 = vld [vmem:[#allocation8 + $0x88c] ss:$16 sps:$4 sm:$0xff]   ;;  %v3946_v45 = vld [vmem:[#allocation8 + $0x880] ss:$16 sps:$4 sm:$0xff]  }
 0x1a3   :  { %2208 = vmatpush1.bf16.msra.mxu0 %v3862_v47  ;;  %2413 = vmatpush1.bf16.msra.mxu1 %v3865_v48  ;;  %v3949_v47 = vld [vmem:[#allocation8 + $0x888] ss:$16 sps:$4 sm:$0xff]   ;;  %v3954_v48 = vld [vmem:[#allocation8 + $0x8a4] ss:$16 sps:$4 sm:$0xff]  }
 0x1a4   :  { %2209 = vmatprep.subr.bf16.mxu0 %v3870_v49  ;;  %2414 = vmatprep.subr.bf16.mxu1 %v3873_v54  ;;  %v3957_v49 = vld [vmem:[#allocation8 + $0x8ac] ss:$16 sps:$4 sm:$0xff]   ;;  %v3952_v54 = vld [vmem:[#allocation8 + $0x8a0] ss:$16 sps:$4 sm:$0xff]  }
 0x1a7   :  { %2210 = vmatpush1.bf16.msra.mxu0 %v3868_v55  ;;  %2415 = vmatpush1.bf16.msra.mxu1 %v3871_v56  ;;  %v3955_v55 = vld [vmem:[#allocation8 + $0x8a8] ss:$16 sps:$4 sm:$0xff]   ;;  %v3960_v56 = vld [vmem:[#allocation8 + $0x8c4] ss:$16 sps:$4 sm:$0xff]  }
 0x1a8   :  { %2211 = vmatprep.subr.bf16.mxu0 %v3876_v57  ;;  %2416 = vmatprep.subr.bf16.mxu1 %v3879_v58  ;;  %v3963_v57 = vld [vmem:[#allocation8 + $0x8cc] ss:$16 sps:$4 sm:$0xff]   ;;  %v3958_v58 = vld [vmem:[#allocation8 + $0x8c0] ss:$16 sps:$4 sm:$0xff]  }
 0x1ab   :  { %2212 = vmatpush1.bf16.msra.mxu0 %v3874_v59  ;;  %2417 = vmatpush1.bf16.msra.mxu1 %v3877_v60  ;;  %v3961_v59 = vld [vmem:[#allocation8 + $0x8c8] ss:$16 sps:$4 sm:$0xff]   ;;  %v3966_v60 = vld [vmem:[#allocation8 + $0x8e4] ss:$16 sps:$4 sm:$0xff]  }
 0x1ac   :  { %2213 = vmatprep.subr.bf16.mxu0 %v3882_v43  ;;  %2418 = vmatprep.subr.bf16.mxu1 %v3885_v52  ;;  %v3969_v43 = vld [vmem:[#allocation8 + $0x8ec] ss:$16 sps:$4 sm:$0xff]   ;;  %v3964_v52 = vld [vmem:[#allocation8 + $0x8e0] ss:$16 sps:$4 sm:$0xff]  }
 0x1af   :  { %2214 = vmatpush1.bf16.msra.mxu0 %v3880_v62  ;;  %2419 = vmatpush1.bf16.msra.mxu1 %v3883_v53  ;;  %v3967_v62 = vld [vmem:[#allocation8 + $0x8e8] ss:$16 sps:$4 sm:$0xff]   ;;  %v3970_v53 = vld [vmem:[#allocation14 + $0x40] sm:$0xff]  }
 0x1b0   :  { %2215 = vmatprep.subr.bf16.mxu0 %v3888_v63  ;;  %2420 = vmatprep.subr.bf16.mxu1 %v3891_v1  ;;  %v3971_v63 = vld [vmem:[#allocation14 + $0xc0] sm:$0xff]   ;;  %v321_v1 = vpack.c.bf16 %v4664_v23, %v4664_v23  ;;  %v3980_v23 = vld [vmem:[#allocation14 + $0x10] sm:$0xff]  }
 0x1b3   :  { %2216 = vmatpush1.bf16.msra.mxu0 %v3886_v2  ;;  %2421 = vmatpush1.bf16.msra.mxu1 %v3889_v3  ;;  %v3972_v2 = vld [vmem:[#allocation14] sm:$0xff]  }
 0x1b4   :  { %2217 = vmatprep.subr.bf16.mxu0 %v3894_v4  ;;  %2422 = vmatprep.subr.bf16.mxu1 %v3897_v5  ;;  %v3973_v3 = vld [vmem:[#allocation14 + $0x80] sm:$0xff]   ;;  %v3974_v4 = vld [vmem:[#allocation14 + $0x48] sm:$0xff]  }
 0x1b5   :  { %v3975_v5 = vld [vmem:[#allocation14 + $0xc8] sm:$0xff]  }
 0x1b7   :  { %2218 = vmatpush1.bf16.msra.mxu0 %v3892_v6  ;;  %2423 = vmatpush1.bf16.msra.mxu1 %v3895_v7  ;;  %v3976_v6 = vld [vmem:[#allocation14 + $0x8] sm:$0xff]  }
 0x1b8   :  { %2219 = vmatprep.subr.bf16.mxu0 %v3900_v8  ;;  %2424 = vmatprep.subr.bf16.mxu1 %v3903_v9  ;;  %v3977_v7 = vld [vmem:[#allocation14 + $0x88] sm:$0xff]   ;;  %v3978_v8 = vld [vmem:[#allocation14 + $0x50] sm:$0xff]  }
 0x1b9   :  { %v3979_v9 = vld [vmem:[#allocation14 + $0xd0] sm:$0xff]  }
 0x1bb   :  { %2220 = vmatpush1.bf16.msra.mxu0 %v3898_v10  ;;  %2425 = vmatpush1.bf16.msra.mxu1 %v3901_v11  ;;  %v3981_v10 = vld [vmem:[#allocation14 + $0x90] sm:$0xff]   ;;  %v3982_v11 = vld [vmem:[#allocation14 + $0x58] sm:$0xff]  }
 0x1bc   :  { %2221 = vmatprep.subr.bf16.mxu0 %v3906_v12  ;;  %2426 = vmatprep.subr.bf16.mxu1 %v3909_v13  ;;  %v3983_v12 = vld [vmem:[#allocation14 + $0xd8] sm:$0xff]  }
 0x1bd   :  { %v3984_v13 = vld [vmem:[#allocation14 + $0x18] sm:$0xff]  }
 0x1bf   :  { %2222 = vmatpush1.bf16.msra.mxu0 %v3904_v14  ;;  %2427 = vmatpush1.bf16.msra.mxu1 %v3907_v15  ;;  %v3985_v14 = vld [vmem:[#allocation14 + $0x98] sm:$0xff]   ;;  %v3986_v15 = vld [vmem:[#allocation14 + $0x60] sm:$0xff]  }
 0x1c0   :  { %2223 = vmatprep.subr.bf16.mxu0 %v3912_v16  ;;  %2428 = vmatprep.subr.bf16.mxu1 %v3915_v17  ;;  %v3987_v16 = vld [vmem:[#allocation14 + $0xe0] sm:$0xff]  }
 0x1c1   :  { %v3988_v17 = vld [vmem:[#allocation14 + $0x20] sm:$0xff]  }
 0x1c3   :  { %2224 = vmatpush1.bf16.msra.mxu0 %v3910_v18  ;;  %2429 = vmatpush1.bf16.msra.mxu1 %v3913_v19  ;;  %v3989_v18 = vld [vmem:[#allocation14 + $0xa0] sm:$0xff]   ;;  %v3990_v19 = vld [vmem:[#allocation14 + $0x68] sm:$0xff]  }
 0x1c4   :  { %2225 = vmatprep.subr.bf16.mxu0 %v3918_v20  ;;  %2430 = vmatprep.subr.bf16.mxu1 %v3921_v21  ;;  %v3991_v20 = vld [vmem:[#allocation14 + $0xe8] sm:$0xff]  }
 0x1c5   :  { %v3992_v21 = vld [vmem:[#allocation14 + $0x28] sm:$0xff]  }
 0x1c7   :  { %2226 = vmatpush1.bf16.msra.mxu0 %v3916_v22  ;;  %2431 = vmatpush1.bf16.msra.mxu1 %v3919_v24  ;;  %v3993_v22 = vld [vmem:[#allocation14 + $0xa8] sm:$0xff]   ;;  %v3994_v24 = vld [vmem:[#allocation14 + $0x70] sm:$0xff]  }
 0x1c8   :  { %2236 = vmatprep.subr.bf16.mxu0 %v3924_v0  ;;  %2441 = vmatprep.subr.bf16.mxu1 %v3927_v25  ;;  %v3995_v0 = vld [vmem:[#allocation14 + $0xf0] sm:$0xff]  }
 0x1c9   :  { %v3996_v25 = vld [vmem:[#allocation14 + $0x30] sm:$0xff]  }
 0x1ca   :  { %2228 = vmatmul.mubr.bf16.vlgmr.msra.gmra.mrb[0].mxu0 %v319_v26  ;;  %2433 = vmatmul.mubr.bf16.vlgmr.msra.gmra.mrb[0].mxu1 %v319_v26  ;;  %v3997_v26 = vld [vmem:[#allocation14 + $0xb0] sm:$0xff]  }
 0x1cb   :  { %2237 = vmatpush1.bf16.msra.mxu0 %v3922_v27  ;;  %2442 = vmatpush1.bf16.msra.mxu1 %v3925_v28  ;;  %v3998_v27 = vld [vmem:[#allocation14 + $0x78] sm:$0xff]  }
 0x1cc   :  { %2238 = vmatprep.subr.bf16.mxu0 %v3930_v29  ;;  %2443 = vmatprep.subr.bf16.mxu1 %v3933_v30  ;;  %v3999_v28 = vld [vmem:[#allocation14 + $0xf8] sm:$0xff]  }
 0x1cd   :  { %2268 = vmatprep.mubr.bf16.mxu0 %v4379_v35  ;;  %2473 = vmatprep.mubr.bf16.mxu1 %v4379_v35  ;;  %v4000_v29 = vld [vmem:[#allocation14 + $0x38] sm:$0xff]  }
 0x1ce   :  { %v4001_v30 = vld [vmem:[#allocation14 + $0xb8] sm:$0xff]  }
 0x1cf   :  { %2239 = vmatpush1.bf16.msra.mxu0 %v3928_v31  ;;  %2444 = vmatpush1.bf16.msra.mxu1 %v3931_v32  ;;  %v4380_v31 = vmov 0.0   ;;  %v610_v32 = vld [vmem:[#allocation10] sm:$0xf] }
 0x1d0   :  { %2240 = vmatprep.subr.bf16.mxu0 %v3936_v33  ;;  %2445 = vmatprep.subr.bf16.mxu1 %v3939_v34  ;;  %v2486_v33 = vld [vmem:[#allocation11] sm:$0xf]  ;;  %v615_v34 = vrot.slane %v610_v32, %v4613_v51  ;;  %v623_v35 = vrot.slane %v610_v32, %v4633_v46 }
 0x1d3   :  { %2241 = vmatpush1.bf16.msra.mxu0 %v3934_v61  ;;  %2446 = vmatpush1.bf16.msra.mxu1 %v3937_v36  ;;  %v2512_v61 = vld [vmem:[#allocation13] sm:$0xf]  ;;  %v619_v36 = vrot.slane %v610_v32, %v4610_v50 }
 0x1d4   :  { %2242 = vmatprep.subr.bf16.mxu0 %v3942_v37  ;;  %2447 = vmatprep.subr.bf16.mxu1 %v3945_v38  ;;  %v627_v37 = vrot.slane %v610_v32, %v4628_v40  ;;  %v2491_v38 = vrot.slane %v2486_v33, %v4613_v51 }
 0x1d7   :  { %2243 = vmatpush1.bf16.msra.mxu0 %v3940_v39  ;;  %2448 = vmatpush1.bf16.msra.mxu1 %v3943_v41  ;;  %v2499_v39 = vrot.slane %v2486_v33, %v4633_v46 }
 0x1d8   :  { %2244 = vmatprep.subr.bf16.mxu0 %v3948_v42  ;;  %2449 = vmatprep.subr.bf16.mxu1 %v3951_v44  ;;  %v2495_v44 = vrot.slane %v2486_v33, %v4610_v50 }
 0x1db   :  { %2245 = vmatpush1.bf16.msra.mxu0 %v3946_v45  ;;  %2450 = vmatpush1.bf16.msra.mxu1 %v3949_v47  ;;  %v2503_v45 = vrot.slane %v2486_v33, %v4628_v40 }
 0x1dc   :  { %2246 = vmatprep.subr.bf16.mxu0 %v3954_v48  ;;  %2451 = vmatprep.subr.bf16.mxu1 %v3957_v49  ;;  %v2517_v48 = vrot.slane %v2512_v61, %v4613_v51 }
 0x1df   :  { %2247 = vmatpush1.bf16.msra.mxu0 %v3952_v54  ;;  %2452 = vmatpush1.bf16.msra.mxu1 %v3955_v55  ;;  %v2525_v54 = vrot.slane %v2512_v61, %v4633_v46 }
 0x1e0   :  { %2248 = vmatprep.subr.bf16.mxu0 %v3960_v56  ;;  %2453 = vmatprep.subr.bf16.mxu1 %v3963_v57 }
 0x1e3   :  { %2249 = vmatpush1.bf16.msra.mxu0 %v3958_v58  ;;  %2454 = vmatpush1.bf16.msra.mxu1 %v3961_v59  ;;  %v2521_v58 = vrot.slane %v2512_v61, %v4610_v50 }
 0x1e4   :  { %2250 = vmatprep.subr.bf16.mxu0 %v3966_v60  ;;  %2455 = vmatprep.subr.bf16.mxu1 %v3969_v43  ;;  %v2529_v60 = vrot.slane %v2512_v61, %v4628_v40 }
 0x1e7   :  { %2251 = vmatpush1.bf16.msra.mxu0 %v3964_v52  ;;  %2456 = vmatpush1.bf16.msra.mxu1 %v3967_v62 }
 0x1e8   :  { %3407 = vmatprep.subr.bf16.mxu0 %v3970_v53  ;;  %3429 = vmatprep.subr.bf16.mxu1 %v3971_v63 }
 0x1ea   :  { %2269 = vmatmul.mubr.bf16.vlgmr.msra.gmra.mrb[0].mxu0 %v321_v1  ;;  %2474 = vmatmul.mubr.bf16.vlgmr.msra.gmra.mrb[0].mxu1 %v321_v1 }
 0x1eb   :  { %3408 = vmatpush3.bf16.msra.mxu0 %v3972_v2  ;;  %3430 = vmatpush3.bf16.msra.mxu1 %v3973_v3 }
 0x1ec   :  { %3409 = vmatprep.subr.bf16.mxu0 %v3974_v4  ;;  %3431 = vmatprep.subr.bf16.mxu1 %v3975_v5 }
 0x1ef   :  { %3410 = vmatpush3.bf16.msra.mxu0 %v3976_v6  ;;  %3432 = vmatpush3.bf16.msra.mxu1 %v3977_v7 }
 0x1f0   :  { %3411 = vmatprep.subr.bf16.mxu0 %v3978_v8  ;;  %3433 = vmatprep.subr.bf16.mxu1 %v3979_v9 }
 0x1f3   :  { %3412 = vmatpush3.bf16.msra.mxu0 %v3980_v23  ;;  %3434 = vmatpush3.bf16.msra.mxu1 %v3981_v10  ;;  %v4002_v23 = vld [vmem:[#allocation17] sm:$0xff]  }
 0x1f4   :  { %3413 = vmatprep.subr.bf16.mxu0 %v3982_v11  ;;  %3435 = vmatprep.subr.bf16.mxu1 %v3983_v12  ;;  %v4003_v12 = vld [vmem:[#allocation17 + $0x8] sm:$0xff]  }
 0x1f7   :  { %3414 = vmatpush3.bf16.msra.mxu0 %v3984_v13  ;;  %3436 = vmatpush3.bf16.msra.mxu1 %v3985_v14  ;;  %v4004_v13 = vld [vmem:[#allocation17 + $0x10] sm:$0xff]   ;;  %v4005_v14 = vld [vmem:[#allocation17 + $0x18] sm:$0xff]  }
 0x1f8   :  { %3415 = vmatprep.subr.bf16.mxu0 %v3986_v15  ;;  %3437 = vmatprep.subr.bf16.mxu1 %v3987_v16  ;;  %v4006_v15 = vld [vmem:[#allocation17 + $0x20] sm:$0xff]   ;;  %v4007_v16 = vld [vmem:[#allocation17 + $0x28] sm:$0xff]  }
 0x1fb   :  { %3416 = vmatpush3.bf16.msra.mxu0 %v3988_v17  ;;  %3438 = vmatpush3.bf16.msra.mxu1 %v3989_v18  ;;  %v4008_v17 = vld [vmem:[#allocation17 + $0x30] sm:$0xff]   ;;  %v4009_v18 = vld [vmem:[#allocation17 + $0x38] sm:$0xff]  }
 0x1fc   :  { %3417 = vmatprep.subr.bf16.mxu0 %v3990_v19  ;;  %3439 = vmatprep.subr.bf16.mxu1 %v3991_v20 }
 0x1ff   :  { %3418 = vmatpush3.bf16.msra.mxu0 %v3992_v21  ;;  %3440 = vmatpush3.bf16.msra.mxu1 %v3993_v22  ;;  %v3364_v21 = vld [vmem:[#allocation16] ss:$0 sm:$0xff] }
 0x200   :  { %3419 = vmatprep.subr.bf16.mxu0 %v3994_v24  ;;  %3441 = vmatprep.subr.bf16.mxu1 %v3995_v0 }
 0x203   :  { %3420 = vmatpush3.bf16.msra.mxu0 %v3996_v25  ;;  %3442 = vmatpush3.bf16.msra.mxu1 %v3997_v26 }
 0x204   :  { %3421 = vmatprep.subr.bf16.mxu0 %v3998_v27  ;;  %3443 = vmatprep.subr.bf16.mxu1 %v3999_v28 }
 0x207   :  { %3422 = vmatpush3.bf16.msra.mxu0 %v4000_v29  ;;  %3444 = vmatpush3.bf16.msra.mxu1 %v4001_v30 }
 0x208   :  { %3460 = vmatprep.subr.bf16.mxu0 %v4380_v31 }
 0x2bd   :  { %v2270_v41 = vpop.f32.mrb[0].mxu0  ;;  %v2475_v42 = vpop.f32.mrb[0].mxu1 }
 0x2be   :  { %v3480_v47 = vadd.f32 %v2270_v41, %v615_v34  ;;  %v3482_v49 = vadd.f32 %v2475_v42, %v623_v35  ;;  %v2272_v55 = vpop.f32.mrb[1].mxu0  ;;  %v2477_v56 = vpop.f32.mrb[1].mxu1 }
 0x2bf   :  { %v3481_v57 = vadd.f32 %v2272_v55, %v619_v36  ;;  %v3483_v59 = vadd.f32 %v2477_v56, %v627_v37  ;;  %v2274_v43 = vpop.f32.mrb[2].mxu0  ;;  %v2479_v52 = vpop.f32.mrb[2].mxu1 }
 0x2c0   :  { %2482 = vst [vmem:[#allocation23] sm:$0xff] %v3480_v47  ;;  %v2508_v62 = vmul.f32 %v3480_v47, %v2491_v38  ;;  %v2542_v53 = vmax.f32 %v3480_v47, 0.0  ;;  %2484 = vst [vmem:[#allocation23 + $0x10] sm:$0xff] %v3482_v49  ;;  %v2510_v63 = vmul.f32 %v3482_v49, %v2499_v39  ;;  %v2544_v1 = vmax.f32 %v3482_v49, 0.0  ;;  %v2275_v51 = vpop.f32.mrb[3].mxu0  ;;  %v2480_v2 = vpop.f32.mrb[3].mxu1 }
 0x2c1   :  { %2483 = vst [vmem:[#allocation23 + $0x8] sm:$0xff] %v3481_v57  ;;  %v2509_v46 = vmul.f32 %v3481_v57, %v2495_v44  ;;  %2485 = vst [vmem:[#allocation23 + $0x18] sm:$0xff] %v3483_v59  ;;  %v2511_v3 = vmul.f32 %v3483_v59, %v2503_v45  ;;  %v2543_v4 = vmax.f32 %v3481_v57, 0.0  ;;  %v2545_v5 = vmax.f32 %v3483_v59, 0.0 }
 0x2c2   :  { %v2534_v50 = vadd.f32 %v2517_v48, %v2508_v62  ;;  %v2536_v6 = vadd.f32 %v2525_v54, %v2510_v63  ;;  %v2546_v10 = vpack.c.bf16 %v2542_v53, %v2542_v53  ;;  %v2548_v11 = vpack.c.bf16 %v2544_v1, %v2544_v1 }
 0x2c3   :  { %v2535_v7 = vadd.f32 %v2521_v58, %v2509_v46  ;;  %v2537_v40 = vadd.f32 %v2529_v60, %v2511_v3  ;;  %v2547_v8 = vpack.c.bf16 %v2543_v4, %v2543_v4  ;;  %v2549_v9 = vpack.c.bf16 %v2545_v5, %v2545_v5 }
 0x2c4   :  { %2538 = vst [vmem:[#allocation24] sm:$0xff] %v2534_v50  ;;  %2540 = vst [vmem:[#allocation24 + $0x10] sm:$0xff] %v2536_v6 }
 0x2c5   :  { %2539 = vst [vmem:[#allocation24 + $0x8] sm:$0xff] %v2535_v7  ;;  %2541 = vst [vmem:[#allocation24 + $0x18] sm:$0xff] %v2537_v40  ;;  %2845 = vmatprep.mubr.bf16.mxu0 %v2547_v8  ;;  %2885 = vmatprep.mubr.bf16.mxu1 %v2549_v9 }
 0x2c6   :  { %2846 = vmatmul.mubr.bf16.vlgmr.msra.gmra.mrb[4].mxu0 %v2546_v10  ;;  %2886 = vmatmul.mubr.bf16.vlgmr.msra.gmra.mrb[4].mxu1 %v2548_v11 }
 0x2c7   :  { %3461 = vmatpush3.bf16.msra.mxu0 %v4002_v23  ;;  %3476 = vmatprep.mubr.msk.bf16.mxu0 %vm4381_vm0, %v4380_v31 }
 0x2c8   :  { %3462 = vmatprep.subr.bf16.mxu0 %v4380_v31 }
 0x2cb   :  { %3463 = vmatpush3.bf16.msra.mxu0 %v4003_v12 }
 0x2cc   :  { %3464 = vmatprep.subr.bf16.mxu0 %v4380_v31 }
 0x2cf   :  { %3465 = vmatpush3.bf16.msra.mxu0 %v4004_v13 }
 0x2d0   :  { %3466 = vmatprep.subr.bf16.mxu0 %v4380_v31 }
 0x2d3   :  { %3467 = vmatpush3.bf16.msra.mxu0 %v4005_v14 }
 0x2d4   :  { %3468 = vmatprep.subr.bf16.mxu0 %v4380_v31 }
 0x2d7   :  { %3469 = vmatpush3.bf16.msra.mxu0 %v4006_v15 }
 0x2d8   :  { %3470 = vmatprep.subr.bf16.mxu0 %v4380_v31 }
 0x2db   :  { %3471 = vmatpush3.bf16.msra.mxu0 %v4007_v16 }
 0x2dc   :  { %3472 = vmatprep.subr.bf16.mxu0 %v4380_v31 }
 0x2df   :  { %3473 = vmatpush3.bf16.msra.mxu0 %v4008_v17 }
 0x2e0   :  { %3474 = vmatprep.subr.bf16.mxu0 %v4380_v31 }
 0x2e3   :  { %3475 = vmatpush3.bf16.msra.mxu0 %v4009_v18 }
 0x399   :  { %v3423_v19 = vpop.f32.mrb[4].mxu0  ;;  %v3445_v20 = vpop.f32.mrb[4].mxu1 }
 0x39a   :  { %v3424_v22 = vpop.f32.mrb[5].mxu0  ;;  %v3446_v24 = vpop.f32.mrb[5].mxu1 }
 0x39b   :  { %v3425_v0 = vadd.f32 %v3424_v22, %v3423_v19  ;;  %v3447_v25 = vadd.f32 %v3446_v24, %v3445_v20  ;;  %v3426_v26 = vpop.f32.mrb[6].mxu0  ;;  %v3448_v27 = vpop.f32.mrb[6].mxu1 }
 0x39c   :  { %v3427_v28 = vpop.f32.mrb[7].mxu0  ;;  %v3449_v29 = vpop.f32.mrb[7].mxu1 }
 0x39d   :  { %v2848_v30 = vadd.f32 %v3425_v0, %v3364_v21 }
 0x39f   :  { %v2888_v32 = vadd.f32 %v3447_v25, %v2848_v30 }
 0x3a1   :  { %v2893_v33 = vmax.f32 %v2888_v32, 0.0 }
 0x3a3   :  { %v2894_v34 = vpack.c.bf16 %v2893_v33, %v2893_v33 }
 0x3a5   :  { %3477 = vmatmul.mubr.bf16.vlgmr.msra.gmra.mrb[8].mxu0 %v2894_v34 }
 0x3a6   :  { %4269 = shalt.err (!%p4266_p8)
}
 0x3a7   :  { %s4270_s20 = scalar_lea.hbm %s4752_s12, 1152 }
 0x3a8   :  { %p4271_p9 = scmp.ne.s32.totalorder %s4752_s12, %s4270_s20  ;;  %p4274_p10 = scmp.lt.u32.totalorder %s4270_s20, %s4752_s12 }
 0x3aa   :  { %p4276_p11 = pnand %p4274_p10, %p4271_p9 }
 0x3ac   :  { %4279 = shalt.err (!%p4276_p11)
}
 0x3ad   :  { %3032 = dma.vmem_to_hbm [thread:$0]  %s3030_s30, 1152, %s4752_s12, [#allocation22]  }
 0x3ae   :  { %s4383_s6 = smov [#allocation23]   ;;  %s4384_s1 = smov [#allocation24]  }
 0x3af   :  { %s3039_s19 = sshll.u32 %s4383_s6, 4  ;;  %s3049_s22 = sshll.u32 %s4384_s1, 4  ;;  %s3040_s19 = int_to_ptr.vmem [resolvable:$true] %s3039_s19  ;;  %s3050_s22 = int_to_ptr.vmem [resolvable:$true] %s3049_s22 }
 0x3b0   :  { %s4280_s23 = scalar_lea.vmem %s3040_s19, 512  ;;  %p4285_p13 = scmp.lt.s32.totalorder %s3040_s19, %s3040_s19 }
 0x3b1   :  { %p4281_p12 = scmp.ne.s32.totalorder %s3040_s19, %s4280_s23  ;;  %p4286_p0 = scmp.lt.s32.totalorder %s4280_s23, %s4280_s23 }
 0x3b3   :  { %p4287_p1 = por %p4286_p0, %p4285_p13 }
 0x3b5   :  { %p4288_p2 = pnand %p4287_p1, %p4281_p12 }
 0x3b7   :  { %4291 = shalt.err (!%p4288_p2)
}
 0x3b8   :  { %s4292_s26 = scalar_lea.hbm %s4753_s13, 512 }
 0x3b9   :  { %p4293_p3 = scmp.ne.s32.totalorder %s4753_s13, %s4292_s26  ;;  %p4296_p4 = scmp.lt.u32.totalorder %s4292_s26, %s4753_s13 }
 0x3bb   :  { %p4298_p5 = pnand %p4296_p4, %p4293_p3 }
 0x3bd   :  { %4301 = shalt.err (!%p4298_p5)
}
 0x3be   :  { %3042 = dma.vmem_to_hbm [thread:$0]  %s3040_s19, 512, %s4753_s13, [#allocation22]  }
 0x3bf   :  { %s4302_s24 = scalar_lea.vmem %s3050_s22, 512  ;;  %p4307_p7 = scmp.lt.s32.totalorder %s3050_s22, %s3050_s22 }
 0x3c0   :  { %p4303_p6 = scmp.ne.s32.totalorder %s3050_s22, %s4302_s24  ;;  %p4308_p8 = scmp.lt.s32.totalorder %s4302_s24, %s4302_s24 }
 0x3c2   :  { %p4309_p9 = por %p4308_p8, %p4307_p7 }
 0x3c4   :  { %p4310_p10 = pnand %p4309_p9, %p4303_p6 }
 0x3c6   :  { %4313 = shalt.err (!%p4310_p10)
}
 0x3c7   :  { %s4314_s30 = scalar_lea.hbm %s4754_s14, 512 }
 0x3c8   :  { %p4315_p11 = scmp.ne.s32.totalorder %s4754_s14, %s4314_s30  ;;  %p4318_p12 = scmp.lt.u32.totalorder %s4314_s30, %s4754_s14 }
 0x3ca   :  { %p4320_p13 = pnand %p4318_p12, %p4315_p11 }
 0x3cc   :  { %4323 = shalt.err (!%p4320_p13)
}
 0x3cd   :  { %3052 = dma.vmem_to_hbm [thread:$0]  %s3050_s22, 512, %s4754_s14, [#allocation25]   ;;  %v3397_v31 = vld [vmem:[#allocation19] ss:$0 sm:$0xff] }
 0x3ce   :  { %s4385_s21 = smov [#allocation20]  }
 0x3cf   :  { %s3019_s9 = sshll.u32 %s4385_s21, 4  ;;  %s3020_s9 = int_to_ptr.vmem [resolvable:$true] %s3019_s9 }
 0x3d0   :  { %s4324_s5 = scalar_lea.vmem %s3020_s9, 128  ;;  %p4329_p1 = scmp.lt.s32.totalorder %s3020_s9, %s3020_s9 }
 0x3d1   :  { %p4325_p0 = scmp.ne.s32.totalorder %s3020_s9, %s4324_s5  ;;  %p4330_p2 = scmp.lt.s32.totalorder %s4324_s5, %s4324_s5 }
 0x3d3   :  { %p4331_p3 = por %p4330_p2, %p4329_p1 }
 0x3d5   :  { %p4332_p4 = pnand %p4331_p3, %p4325_p0 }
 0x478   :  { %v3000_v35 = vpop.f32.mrb[8].mxu0 }
 0x479   :  { %v3001_v61 = vadd.f32 %v3397_v31, %v3000_v35  ;;  %v3478_v36 = vpop.f32.mrb[9].mxu0 }
 0x47a   :  { %v3003_v37 = vpop.f32.mrb[10].mxu0 }
 0x47b   :  { %v3406_v38 = vmul.f32 -1.442695, %v3001_v61  ;;  %v3479_v39 = vpop.f32.mrb[11].mxu0 }
 0x47d   :  { %4010 = vpow2.f32 %v3406_v38 }
 0x487   :  { %v4011_v41 = vpop.eup %4010 }
 0x488   :  { %v3009_v42 = vadd.f32 1.0, %v4011_v41 }
 0x48a   :  { %4012 = vrcp.f32 %v3009_v42 }
 0x494   :  { %v4013_v44 = vpop.eup %4012 }
 0x495   :  { %3012 = vst [vmem:[#allocation20] sm:$0xff] %v4013_v44 }
 0x496   :  { %4335 = shalt.err (!%p4332_p4)
}
 0x497   :  { %s4336_s2 = scalar_lea.hbm %s4751_s11, 128 }
 0x498   :  { %p4337_p5 = scmp.ne.s32.totalorder %s4751_s11, %s4336_s2  ;;  %p4340_p6 = scmp.lt.u32.totalorder %s4336_s2, %s4751_s11 }
 0x49a   :  { %p4342_p7 = pnand %p4340_p6, %p4337_p5 }
 0x49c   :  { %4345 = shalt.err (!%p4342_p7)
}
 0x49d   :  { %3022 = dma.vmem_to_hbm [thread:$0]  %s3020_s9, 128, %s4751_s11, [#allocation4]  }
 0x49e   :  { %4358 = dma.done.wait [#allocation4], 128  }
 0x49f   :  { %4359 = vsyncadd [#allocation4], 4294967168 }
 0x4a0   :  { %4360 = dma.done.wait [#allocation22], 1664  }
 0x4a1   :  { %4361 = vsyncadd [#allocation22], 4294965632 }
 0x4a2   :  { %4362 = dma.done.wait [#allocation25], 512  }
 0x4a3   :  { %4363 = vsyncadd [#allocation25], 4294966784 }
 0x4a4   :  { %3065 = vsyncpa [#allocation3], 1 }
 0x4a5   :  { %3066 = vsyncpa [#allocation6], 1 }
 0x4a6   :  { %3067 = vsyncpa [#allocation9], 1 }
 0x4a7   :  { %3068 = vsyncpa [#allocation12], 1 }
 0x4a8   :  { %3069 = vsyncpa [#allocation15], 1 }
 0x4a9   :  { %3070 = vsyncpa [#allocation18], 1 }
 0x4aa   :  { %3071 = vsyncpa [#allocation4], 1 }
 0x4ab   :  { %3072 = vsyncpa [#allocation22], 1 }
 0x4ac   :  { %3073 = vsyncpa [#allocation25], 1 }

</bundles_post_ra>
